<compile_context>
chip_gen: v6e
topology: v6e:2x2x1
jax: 0.10.0
libtpu: 0.0.40
codegen_flags: <defaults>
</compile_context>

<pallas_src>
import functools

import jax
import jax.numpy as jnp
from jax.experimental import pallas as pl
from jax.experimental.pallas import tpu as pltpu


_SQRT_HALF = 0.7071067811865476
_LN_EPS = 1e-12


# ----------------------------------------------------------------------------
# In-kernel math helpers (operate on loaded values, not refs)
# ----------------------------------------------------------------------------

def _layer_norm(x, g, b, eps):
    mean = jnp.mean(x, axis=-1, keepdims=True)
    var = jnp.mean(jnp.square(x - mean), axis=-1, keepdims=True)
    return (x - mean) * jax.lax.rsqrt(var + eps) * g + b


def _gelu_exact(x):
    return 0.5 * x * (1.0 + jax.lax.erf(x * _SQRT_HALF))


# ----------------------------------------------------------------------------
# Fused encoder-stack kernel: grid = (batch, layer)
# ----------------------------------------------------------------------------

def _bert_encoder_kernel(emb_ref, bias_ref, eg_ref, eb_ref,
                         wqkv_ref, bqkv_ref, wo_ref, bo_ref,
                         ln1g_ref, ln1b_ref,
                         wi_ref, bi_ref, wu_ref, bu_ref,
                         ln2g_ref, ln2b_ref,
                         o_ref, h_scratch,
                         *, num_heads, head_dim, eps):
    """One encoder layer of one batch element.

    The hidden state is carried across the layer grid axis in `h_scratch`
    (VMEM, f32).  Layer 0 first applies the embedding LayerNorm; the last
    layer writes the final hidden states to HBM.
    """
    layer_idx = pl.program_id(1)

    # ---- layer 0: embedding LayerNorm seeds the resident hidden state ------
    @pl.when(layer_idx == 0)
    def _():
        h_scratch[...] = _layer_norm(emb_ref[...], eg_ref[...], eb_ref[...], eps)

    x = h_scratch[...]                          # [S, H] f32
    x_bf = x.astype(jnp.bfloat16)
    S, H = x.shape

    # ---- fused Q/K/V projection: one MXU matmul, bf16 in / f32 accumulate --
    qkv = jnp.dot(x_bf, wqkv_ref[...],
                  preferred_element_type=jnp.float32) + bqkv_ref[...]   # [S, 3H]
    q, k, v = qkv[:, :H], qkv[:, H:2 * H], qkv[:, 2 * H:]

    bias = bias_ref[...]                        # [1, S] broadcasts over queries
    inv_sqrt_d = 1.0 / (head_dim ** 0.5)

    # ---- per-head scaled-dot-product attention (static unroll over heads) --
    # TODO(synk): at real seq lengths switch to an online-softmax (flash)
    # formulation tiled over keys instead of the full [S, S] score matrix.
    ctx_heads = []
    for hd in range(num_heads):
        lo = hd * head_dim
        qh = q[:, lo:lo + head_dim].astype(jnp.bfloat16)
        kh = k[:, lo:lo + head_dim].astype(jnp.bfloat16)
        vh = v[:, lo:lo + head_dim].astype(jnp.bfloat16)
        s = jnp.einsum("qd,kd->qk", qh, kh,
                       preferred_element_type=jnp.float32) * inv_sqrt_d + bias
        s = s - jnp.max(s, axis=-1, keepdims=True)
        p = jnp.exp(s)
        p = p * pl.reciprocal(jnp.sum(p, axis=-1, keepdims=True), approx=True)
        ctx_heads.append(jnp.dot(p.astype(jnp.bfloat16), vh,
                                 preferred_element_type=jnp.float32))
    ctx = jnp.concatenate(ctx_heads, axis=-1)   # [S, H] f32

    # ---- attention output projection + residual + LayerNorm ----------------
    attn_out = jnp.dot(ctx.astype(jnp.bfloat16), wo_ref[...],
                       preferred_element_type=jnp.float32) + bo_ref[...]
    h1 = _layer_norm(attn_out + x, ln1g_ref[...], ln1b_ref[...], eps)

    # ---- FFN with fused exact-erf GELU + residual + LayerNorm --------------
    ffn = jnp.dot(h1.astype(jnp.bfloat16), wi_ref[...],
                  preferred_element_type=jnp.float32) + bi_ref[...]
    ffn = _gelu_exact(ffn)
    ffn2 = jnp.dot(ffn.astype(jnp.bfloat16), wu_ref[...],
                   preferred_element_type=jnp.float32) + bu_ref[...]
    h2 = _layer_norm(ffn2 + h1, ln2g_ref[...], ln2b_ref[...], eps)

    # ---- carry hidden state to next layer; write out on the last layer -----
    h_scratch[...] = h2

    @pl.when(layer_idx == pl.num_programs(1) - 1)
    def _():
        o_ref[...] = h2.astype(o_ref.dtype)


def bert_encoder(emb, mask_bias, iparams, cfg):
    """Embedding-LN + full encoder stack in a single pallas_call."""
    B, S, H = emb.shape
    I = cfg["intermediate"]
    L = cfg["num_layers"]
    stk = iparams["stacked"]

    kernel = functools.partial(_bert_encoder_kernel,
                               num_heads=cfg["num_heads"],
                               head_dim=cfg["head_dim"],
                               eps=_LN_EPS)

    def per_batch(shape):
        return pl.BlockSpec(shape, lambda b, l: (b, 0, 0))

    def per_layer(shape):
        return pl.BlockSpec(shape, lambda b, l: (l, 0, 0))

    def const2d(shape):
        return pl.BlockSpec(shape, lambda b, l: (0, 0))

    # NOTE: at real BERT shapes (H=768, S=512, big B) the row axis must be
    # tiled with an extra grid dimension to bound VMEM on v7x; at these toy
    # shapes the per-(batch, layer) blocks fit trivially.
    return pl.pallas_call(
        kernel,
        out_shape=jax.ShapeDtypeStruct((B, S, H), jnp.bfloat16),
        grid=(B, L),
        in_specs=[
            per_batch((None, S, H)),                      # raw embedding sum
            per_batch((None, 1, S)),                      # attention mask bias
            const2d((1, H)), const2d((1, H)),             # embedding LN g/b
            per_layer((None, H, 3 * H)), per_layer((None, 1, 3 * H)),  # fused QKV
            per_layer((None, H, H)), per_layer((None, 1, H)),          # attn out
            per_layer((None, 1, H)), per_layer((None, 1, H)),          # LN1 g/b
            per_layer((None, H, I)), per_layer((None, 1, I)),          # inter
            per_layer((None, I, H)), per_layer((None, 1, H)),          # out dense
            per_layer((None, 1, H)), per_layer((None, 1, H)),          # LN2 g/b
        ],
        out_specs=pl.BlockSpec((None, S, H), lambda b, l: (b, 0, 0)),
        scratch_shapes=[pltpu.VMEM((S, H), jnp.float32)],
        compiler_params=pltpu.CompilerParams(
            dimension_semantics=("parallel", "arbitrary")),
    )(emb, mask_bias, iparams["emb_ln_g"], iparams["emb_ln_b"],
      stk["wqkv"], stk["bqkv"], stk["wo"], stk["bo"],
      stk["ln1_g"], stk["ln1_b"],
      stk["wi"], stk["bi"], stk["wu"], stk["bu"],
      stk["ln2_g"], stk["ln2_b"])


# ----------------------------------------------------------------------------
# Parameter construction (deterministic, synthetic — no checkpoint loading)
# ----------------------------------------------------------------------------

CFG = dict(
    vocab_size=100,
    max_pos=32,
    type_vocab=2,
    hidden=128,          # 128-aligned lane dims (lane-dense stores)
    num_heads=2,
    head_dim=64,
    intermediate=512,
    num_layers=2,
    lora_r=4,
    lora_alpha=8,        # alpha/r = 2.0, same ratio as the torch defaults 32/16
)


def init_params(key, cfg):
    keys = iter(jax.random.split(key, 512))

    def norm(shape, std=0.02):
        return jax.random.normal(next(keys), shape, jnp.float32) * std

    H, I, r = cfg["hidden"], cfg["intermediate"], cfg["lora_r"]

    def lora_lin(din, dout):
        # Weights stored [in, out] (transposed vs torch nn.Linear [out, in]).
        # PEFT zero-inits lora_B; we use small non-zero values so the LoRA
        # path carries real numerics through the fold.
        return dict(w=norm((din, dout)),
                    b=jnp.zeros((1, dout), jnp.float32),
                    a=norm((din, r)),
                    bm=norm((r, dout), std=0.01))

    layers = []
    for _ in range(cfg["num_layers"]):
        layers.append(dict(
            q=lora_lin(H, H), k=lora_lin(H, H), v=lora_lin(H, H),
            attn_out=lora_lin(H, H),     # attention.output.dense (LoRA target)
            inter=lora_lin(H, I),        # intermediate.dense     (LoRA target)
            out=lora_lin(I, H),          # output.dense           (LoRA target)
            ln1_g=jnp.ones((1, H), jnp.float32),
            ln1_b=jnp.zeros((1, H), jnp.float32),
            ln2_g=jnp.ones((1, H), jnp.float32),
            ln2_b=jnp.zeros((1, H), jnp.float32),
        ))

    return dict(
        word_emb=norm((cfg["vocab_size"], H)),
        pos_emb=norm((cfg["max_pos"], H)),
        type_emb=norm((cfg["type_vocab"], H)),
        emb_ln_g=jnp.ones((1, H), jnp.float32),
        emb_ln_b=jnp.zeros((1, H), jnp.float32),
        layers=layers,
        cls_w=norm((H, 2)),
        cls_b=jnp.zeros((1, 2), jnp.float32),
    )


def prepare_inference_params(params, cfg):
    """Fold LoRA into base weights (exact for fixed adapters), fuse Q/K/V into
    one [H, 3H] matrix, cast matmul weights to bf16, and stack all per-layer
    tensors along a leading layer axis so the encoder runs as one kernel."""
    scale = cfg["lora_alpha"] / cfg["lora_r"]

    def fold(p):
        return p["w"] + scale * (p["a"] @ p["bm"]), p["b"]

    acc = {k: [] for k in ("wqkv", "bqkv", "wo", "bo", "wi", "bi", "wu", "bu",
                           "ln1_g", "ln1_b", "ln2_g", "ln2_b")}
    for lyr in params["layers"]:
        wq, bq = fold(lyr["q"])
        wk, bk = fold(lyr["k"])
        wv, bv = fold(lyr["v"])
        wo, bo = fold(lyr["attn_out"])
        wi, bi = fold(lyr["inter"])
        wu, bu = fold(lyr["out"])
        acc["wqkv"].append(jnp.concatenate([wq, wk, wv], axis=1).astype(jnp.bfloat16))
        acc["bqkv"].append(jnp.concatenate([bq, bk, bv], axis=1))
        acc["wo"].append(wo.astype(jnp.bfloat16)); acc["bo"].append(bo)
        acc["wi"].append(wi.astype(jnp.bfloat16)); acc["bi"].append(bi)
        acc["wu"].append(wu.astype(jnp.bfloat16)); acc["bu"].append(bu)
        acc["ln1_g"].append(lyr["ln1_g"]); acc["ln1_b"].append(lyr["ln1_b"])
        acc["ln2_g"].append(lyr["ln2_g"]); acc["ln2_b"].append(lyr["ln2_b"])

    stacked = {k: jnp.stack(v, axis=0) for k, v in acc.items()}   # [L, ...]

    return dict(
        word_emb=params["word_emb"], pos_emb=params["pos_emb"],
        type_emb=params["type_emb"],
        emb_ln_g=params["emb_ln_g"], emb_ln_b=params["emb_ln_b"],
        stacked=stacked,
        cls_w=params["cls_w"], cls_b=params["cls_b"])


# ----------------------------------------------------------------------------
# Forward pass
# ----------------------------------------------------------------------------

def lora_bert_classifier_forward(iparams, input_ids, attention_mask, cfg=CFG):
    B, S = input_ids.shape

    # Embedding gather + sum is tiny data-dependent glue; everything from the
    # embedding LayerNorm through the last encoder layer runs in one kernel.
    # TODO(synk): embedding-table gather stays in XLA (data-dependent rows).
    emb = (iparams["word_emb"][input_ids]
           + iparams["pos_emb"][jnp.arange(S)][None, :, :]
           + iparams["type_emb"][0][None, None, :])            # [B, S, H] f32

    # HF-style additive attention mask bias, built once as [B, 1, S]
    # (broadcast over heads/queries inside the kernel — no jnp.repeat).
    mask_bias = ((1.0 - attention_mask.astype(jnp.float32)) * -1e9)[:, None, :]

    h = bert_encoder(emb, mask_bias, iparams, cfg)              # [B, S, H] bf16

    cls_vec = h[:, 0, :].astype(jnp.float32)                    # [B, H] (CLS token)
    # Classifier head (Dropout=identity in eval -> Linear(H, 2)) stays in plain
    # JAX: a [B,H]x[H,2] matmul costs far less than a pallas_call launch.
    logits = cls_vec @ iparams["cls_w"] + iparams["cls_b"]      # [B, 2] f32
    # TODO(synk): labels!=None branch (CrossEntropyLoss) not implemented; the
    # reference forward returns logits when labels is None, which we reproduce.
    return logits


# ----------------------------------------------------------------------------
# Main
# ----------------------------------------------------------------------------

if __name__ == "__main__":
    key = jax.random.PRNGKey(0)
    k_param, k_ids = jax.random.split(key)

    params = init_params(k_param, CFG)
    iparams = prepare_inference_params(params, CFG)

    B, S = 2, 8
    input_ids = jax.random.randint(k_ids, (B, S), 0, CFG["vocab_size"],
                                   dtype=jnp.int32)
    attention_mask = jnp.array(
        [[1, 1, 1, 1, 1, 1, 1, 1],
         [1, 1, 1, 1, 1, 0, 0, 0]], dtype=jnp.int32)

    forward = jax.jit(
        lambda p, ids, m: lora_bert_classifier_forward(p, ids, m, CFG))
    logits = forward(iparams, input_ids, attention_mask)
    jax.block_until_ready(logits)
    assert logits.shape == (B, 2) and logits.dtype == jnp.float32
    print("KERNEL_OK")
</pallas_src>

<mosaic_0001>
module attributes {stable_mosaic.version = 11 : i64} {
  func.func @_bert_encoder_kernel(%arg0: i32, %arg1: i32, %arg2: memref<1x8x128xf32, #tpu.memory_space<vmem>>, %arg3: memref<1x1x8xf32, #tpu.memory_space<vmem>>, %arg4: memref<1x128xf32, #tpu.memory_space<vmem>>, %arg5: memref<1x128xf32, #tpu.memory_space<vmem>>, %arg6: memref<1x128x384xbf16, #tpu.memory_space<vmem>>, %arg7: memref<1x1x384xf32, #tpu.memory_space<vmem>>, %arg8: memref<1x128x128xbf16, #tpu.memory_space<vmem>>, %arg9: memref<1x1x128xf32, #tpu.memory_space<vmem>>, %arg10: memref<1x1x128xf32, #tpu.memory_space<vmem>>, %arg11: memref<1x1x128xf32, #tpu.memory_space<vmem>>, %arg12: memref<1x128x512xbf16, #tpu.memory_space<vmem>>, %arg13: memref<1x1x512xf32, #tpu.memory_space<vmem>>, %arg14: memref<1x512x128xbf16, #tpu.memory_space<vmem>>, %arg15: memref<1x1x128xf32, #tpu.memory_space<vmem>>, %arg16: memref<1x1x128xf32, #tpu.memory_space<vmem>>, %arg17: memref<1x1x128xf32, #tpu.memory_space<vmem>>, %arg18: memref<1x8x128xbf16, #tpu.memory_space<vmem>>, %arg19: memref<8x128xf32, #tpu.memory_space<vmem>>) attributes {dimension_semantics = [#tpu.dimension_semantics<parallel>, #tpu.dimension_semantics<arbitrary>], iteration_bounds = array<i64: 2, 2>, scalar_prefetch = 0 : i64, scratch_operands = 1 : i64, tpu.core_type = #tpu.core_type<tc>, window_params = [{transform_indices = @transform_0, window_bounds = array<i64: 1, 8, 128>}, {transform_indices = @transform_1, window_bounds = array<i64: 1, 1, 8>}, {pipeline_mode = #tpu.pipeline_mode<synchronous>, transform_indices = @transform_2, window_bounds = array<i64: 1, 128>}, {pipeline_mode = #tpu.pipeline_mode<synchronous>, transform_indices = @transform_3, window_bounds = array<i64: 1, 128>}, {transform_indices = @transform_4, window_bounds = array<i64: 1, 128, 384>}, {transform_indices = @transform_5, window_bounds = array<i64: 1, 1, 384>}, {transform_indices = @transform_6, window_bounds = array<i64: 1, 128, 128>}, {transform_indices = @transform_7, window_bounds = array<i64: 1, 1, 128>}, {transform_indices = @transform_8, window_bounds = array<i64: 1, 1, 128>}, {transform_indices = @transform_9, window_bounds = array<i64: 1, 1, 128>}, {transform_indices = @transform_10, window_bounds = array<i64: 1, 128, 512>}, {transform_indices = @transform_11, window_bounds = array<i64: 1, 1, 512>}, {transform_indices = @transform_12, window_bounds = array<i64: 1, 512, 128>}, {transform_indices = @transform_13, window_bounds = array<i64: 1, 1, 128>}, {transform_indices = @transform_14, window_bounds = array<i64: 1, 1, 128>}, {transform_indices = @transform_15, window_bounds = array<i64: 1, 1, 128>}, {transform_indices = @transform_16, window_bounds = array<i64: 1, 8, 128>}]} {
    %c0_i32 = arith.constant 0 : i32
    %0 = arith.cmpi eq, %arg1, %c0_i32 : i32
    %1 = arith.extui %0 : i1 to i32
    %c0_i32_0 = arith.constant 0 : i32
    %2 = arith.cmpi ne, %1, %c0_i32_0 : i32
    scf.if %2 {
      %c0_70 = arith.constant 0 : index
      %c0_71 = arith.constant 0 : index
      %c0_72 = arith.constant 0 : index
      %154 = vector.load %arg2[%c0_70, %c0_71, %c0_72] : memref<1x8x128xf32, #tpu.memory_space<vmem>>, vector<1x8x128xf32>
      %155 = vector.shape_cast %154 : vector<1x8x128xf32> to vector<8x128xf32>
      %c0_73 = arith.constant 0 : index
      %c0_74 = arith.constant 0 : index
      %156 = vector.load %arg4[%c0_73, %c0_74] : memref<1x128xf32, #tpu.memory_space<vmem>>, vector<1x128xf32>
      %c0_75 = arith.constant 0 : index
      %c0_76 = arith.constant 0 : index
      %157 = vector.load %arg5[%c0_75, %c0_76] : memref<1x128xf32, #tpu.memory_space<vmem>>, vector<1x128xf32>
      %cst_77 = arith.constant dense<0.000000e+00> : vector<8xf32>
      %158 = vector.multi_reduction <add>, %155, %cst_77 [1] : vector<8x128xf32> to vector<8xf32>
      %159 = vector.shape_cast %158 : vector<8xf32> to vector<8x1xf32>
      %cst_78 = arith.constant 1.280000e+02 : f32
      %160 = vector.broadcast %cst_78 : f32 to vector<8x1xf32>
      %161 = arith.divf %159, %160 : vector<8x1xf32>
      %162 = vector.broadcast %161 : vector<8x1xf32> to vector<8x128xf32>
      %163 = arith.subf %155, %162 : vector<8x128xf32>
      %164 = arith.mulf %163, %163 : vector<8x128xf32>
      %cst_79 = arith.constant dense<0.000000e+00> : vector<8xf32>
      %165 = vector.multi_reduction <add>, %164, %cst_79 [1] : vector<8x128xf32> to vector<8xf32>
      %166 = vector.shape_cast %165 : vector<8xf32> to vector<8x1xf32>
      %cst_80 = arith.constant 1.280000e+02 : f32
      %167 = vector.broadcast %cst_80 : f32 to vector<8x1xf32>
      %168 = arith.divf %166, %167 : vector<8x1xf32>
      %169 = vector.broadcast %161 : vector<8x1xf32> to vector<8x128xf32>
      %170 = arith.subf %155, %169 : vector<8x128xf32>
      %cst_81 = arith.constant 9.99999996E-13 : f32
      %171 = vector.broadcast %cst_81 : f32 to vector<8x1xf32>
      %172 = arith.addf %168, %171 : vector<8x1xf32>
      %173 = math.rsqrt %172 : vector<8x1xf32>
      %174 = vector.broadcast %173 : vector<8x1xf32> to vector<8x128xf32>
      %175 = arith.mulf %170, %174 : vector<8x128xf32>
      %176 = vector.broadcast %156 : vector<1x128xf32> to vector<8x128xf32>
      %177 = arith.mulf %175, %176 : vector<8x128xf32>
      %178 = vector.broadcast %157 : vector<1x128xf32> to vector<8x128xf32>
      %179 = arith.addf %177, %178 : vector<8x128xf32>
      %c0_82 = arith.constant 0 : index
      %c0_83 = arith.constant 0 : index
      %180 = vector.load %arg19[%c0_82, %c0_83] : memref<8x128xf32, #tpu.memory_space<vmem>>, vector<8x128xf32>
      tpu.vector_store %arg19[%c0_82, %c0_83], %179 {strides = array<i32>} : memref<8x128xf32, #tpu.memory_space<vmem>>, vector<8x128xf32>,
    } else {
    }
    %c0 = arith.constant 0 : index
    %c0_1 = arith.constant 0 : index
    %3 = vector.load %arg19[%c0, %c0_1] : memref<8x128xf32, #tpu.memory_space<vmem>>, vector<8x128xf32>
    %4 = arith.truncf %3 : vector<8x128xf32> to vector<8x128xbf16>
    %c0_2 = arith.constant 0 : index
    %c0_3 = arith.constant 0 : index
    %c0_4 = arith.constant 0 : index
    %5 = vector.load %arg6[%c0_2, %c0_3, %c0_4] : memref<1x128x384xbf16, #tpu.memory_space<vmem>>, vector<1x128x384xbf16>
    %6 = vector.shape_cast %5 : vector<1x128x384xbf16> to vector<128x384xbf16>
    %cst = arith.constant dense<0.000000e+00> : vector<8x384xf32>
    %7 = tpu.matmul %4, %6, %cst {dimension_numbers = #tpu.dot_dimension_numbers<[1], [0], [0], [1], [0, 0, 1, 1], [], []>} : vector<8x128xbf16>, vector<128x384xbf16>, vector<8x384xf32> -> vector<8x384xf32>
    %c0_5 = arith.constant 0 : index
    %c0_6 = arith.constant 0 : index
    %c0_7 = arith.constant 0 : index
    %8 = vector.load %arg7[%c0_5, %c0_6, %c0_7] : memref<1x1x384xf32, #tpu.memory_space<vmem>>, vector<1x1x384xf32>
    %9 = vector.shape_cast %8 : vector<1x1x384xf32> to vector<1x384xf32>
    %10 = vector.broadcast %9 : vector<1x384xf32> to vector<8x384xf32>
    %11 = arith.addf %7, %10 : vector<8x384xf32>
    %12 = vector.extract_strided_slice %11 {offsets = [0, 0], sizes = [8, 128], strides = [1, 1]} : vector<8x384xf32> to vector<8x128xf32>
    %13 = vector.extract_strided_slice %11 {offsets = [0, 128], sizes = [8, 128], strides = [1, 1]} : vector<8x384xf32> to vector<8x128xf32>
    %14 = vector.extract_strided_slice %11 {offsets = [0, 256], sizes = [8, 128], strides = [1, 1]} : vector<8x384xf32> to vector<8x128xf32>
    %c0_8 = arith.constant 0 : index
    %c0_9 = arith.constant 0 : index
    %c0_10 = arith.constant 0 : index
    %15 = vector.load %arg3[%c0_8, %c0_9, %c0_10] : memref<1x1x8xf32, #tpu.memory_space<vmem>>, vector<1x1x8xf32>
    %16 = vector.shape_cast %15 : vector<1x1x8xf32> to vector<1x8xf32>
    %17 = vector.extract_strided_slice %12 {offsets = [0, 0], sizes = [8, 64], strides = [1, 1]} : vector<8x128xf32> to vector<8x64xf32>
    %18 = arith.truncf %17 : vector<8x64xf32> to vector<8x64xbf16>
    %19 = vector.extract_strided_slice %13 {offsets = [0, 0], sizes = [8, 64], strides = [1, 1]} : vector<8x128xf32> to vector<8x64xf32>
    %20 = arith.truncf %19 : vector<8x64xf32> to vector<8x64xbf16>
    %21 = vector.extract_strided_slice %14 {offsets = [0, 0], sizes = [8, 64], strides = [1, 1]} : vector<8x128xf32> to vector<8x64xf32>
    %22 = arith.truncf %21 : vector<8x64xf32> to vector<8x64xbf16>
    "tpu.trace_start"() <{level = 10 : i32, message = "qd,kd->qk"}> : () -> ()
    %cst_11 = arith.constant dense<0.000000e+00> : vector<8x8xf32>
    %23 = tpu.matmul %18, %20, %cst_11 {dimension_numbers = #tpu.dot_dimension_numbers<[1], [1], [0], [0], [0, 0, 1, 0], [], []>} : vector<8x64xbf16>, vector<8x64xbf16>, vector<8x8xf32> -> vector<8x8xf32>
    "tpu.trace_stop"() : () -> ()
    %cst_12 = arith.constant 1.250000e-01 : f32
    %24 = vector.broadcast %cst_12 : f32 to vector<8x8xf32>
    %25 = arith.mulf %23, %24 : vector<8x8xf32>
    %26 = vector.broadcast %16 : vector<1x8xf32> to vector<8x8xf32>
    %27 = arith.addf %25, %26 : vector<8x8xf32>
    %cst_13 = arith.constant dense<0xFF800000> : vector<8xf32>
    %28 = vector.multi_reduction <maximumf>, %27, %cst_13 [1] : vector<8x8xf32> to vector<8xf32>
    %29 = vector.shape_cast %28 : vector<8xf32> to vector<8x1xf32>
    %30 = vector.broadcast %29 : vector<8x1xf32> to vector<8x8xf32>
    %31 = arith.subf %27, %30 : vector<8x8xf32>
    %32 = math.exp %31 : vector<8x8xf32>
    %cst_14 = arith.constant dense<0.000000e+00> : vector<8xf32>
    %33 = vector.multi_reduction <add>, %32, %cst_14 [1] : vector<8x8xf32> to vector<8xf32>
    %34 = vector.shape_cast %33 : vector<8xf32> to vector<8x1xf32>
    %35 = tpu.reciprocal %34 {approx = true} : vector<8x1xf32> -> vector<8x1xf32>
    %36 = vector.broadcast %35 : vector<8x1xf32> to vector<8x8xf32>
    %37 = arith.mulf %32, %36 : vector<8x8xf32>
    %38 = arith.truncf %37 : vector<8x8xf32> to vector<8x8xbf16>
    %cst_15 = arith.constant dense<0.000000e+00> : vector<8x64xf32>
    %39 = tpu.matmul %38, %22, %cst_15 {dimension_numbers = #tpu.dot_dimension_numbers<[1], [0], [0], [1], [0, 0, 1, 1], [], []>} : vector<8x8xbf16>, vector<8x64xbf16>, vector<8x64xf32> -> vector<8x64xf32>
    %40 = vector.extract_strided_slice %12 {offsets = [0, 64], sizes = [8, 64], strides = [1, 1]} : vector<8x128xf32> to vector<8x64xf32>
    %41 = arith.truncf %40 : vector<8x64xf32> to vector<8x64xbf16>
    %42 = vector.extract_strided_slice %13 {offsets = [0, 64], sizes = [8, 64], strides = [1, 1]} : vector<8x128xf32> to vector<8x64xf32>
    %43 = arith.truncf %42 : vector<8x64xf32> to vector<8x64xbf16>
    %44 = vector.extract_strided_slice %14 {offsets = [0, 64], sizes = [8, 64], strides = [1, 1]} : vector<8x128xf32> to vector<8x64xf32>
    %45 = arith.truncf %44 : vector<8x64xf32> to vector<8x64xbf16>
    "tpu.trace_start"() <{level = 10 : i32, message = "qd,kd->qk"}> : () -> ()
    %cst_16 = arith.constant dense<0.000000e+00> : vector<8x8xf32>
    %46 = tpu.matmul %41, %43, %cst_16 {dimension_numbers = #tpu.dot_dimension_numbers<[1], [1], [0], [0], [0, 0, 1, 0], [], []>} : vector<8x64xbf16>, vector<8x64xbf16>, vector<8x8xf32> -> vector<8x8xf32>
    "tpu.trace_stop"() : () -> ()
    %cst_17 = arith.constant 1.250000e-01 : f32
    %47 = vector.broadcast %cst_17 : f32 to vector<8x8xf32>
    %48 = arith.mulf %46, %47 : vector<8x8xf32>
    %49 = vector.broadcast %16 : vector<1x8xf32> to vector<8x8xf32>
    %50 = arith.addf %48, %49 : vector<8x8xf32>
    %cst_18 = arith.constant dense<0xFF800000> : vector<8xf32>
    %51 = vector.multi_reduction <maximumf>, %50, %cst_18 [1] : vector<8x8xf32> to vector<8xf32>
    %52 = vector.shape_cast %51 : vector<8xf32> to vector<8x1xf32>
    %53 = vector.broadcast %52 : vector<8x1xf32> to vector<8x8xf32>
    %54 = arith.subf %50, %53 : vector<8x8xf32>
    %55 = math.exp %54 : vector<8x8xf32>
    %cst_19 = arith.constant dense<0.000000e+00> : vector<8xf32>
    %56 = vector.multi_reduction <add>, %55, %cst_19 [1] : vector<8x8xf32> to vector<8xf32>
    %57 = vector.shape_cast %56 : vector<8xf32> to vector<8x1xf32>
    %58 = tpu.reciprocal %57 {approx = true} : vector<8x1xf32> -> vector<8x1xf32>
    %59 = vector.broadcast %58 : vector<8x1xf32> to vector<8x8xf32>
    %60 = arith.mulf %55, %59 : vector<8x8xf32>
    %61 = arith.truncf %60 : vector<8x8xf32> to vector<8x8xbf16>
    %cst_20 = arith.constant dense<0.000000e+00> : vector<8x64xf32>
    %62 = tpu.matmul %61, %45, %cst_20 {dimension_numbers = #tpu.dot_dimension_numbers<[1], [0], [0], [1], [0, 0, 1, 1], [], []>} : vector<8x8xbf16>, vector<8x64xbf16>, vector<8x64xf32> -> vector<8x64xf32>
    %63 = tpu.concatenate %39, %62 in 1 : vector<8x64xf32>, vector<8x64xf32> -> vector<8x128xf32>
    %64 = arith.truncf %63 : vector<8x128xf32> to vector<8x128xbf16>
    %c0_21 = arith.constant 0 : index
    %c0_22 = arith.constant 0 : index
    %c0_23 = arith.constant 0 : index
    %65 = vector.load %arg8[%c0_21, %c0_22, %c0_23] : memref<1x128x128xbf16, #tpu.memory_space<vmem>>, vector<1x128x128xbf16>
    %66 = vector.shape_cast %65 : vector<1x128x128xbf16> to vector<128x128xbf16>
    %cst_24 = arith.constant dense<0.000000e+00> : vector<8x128xf32>
    %67 = tpu.matmul %64, %66, %cst_24 {dimension_numbers = #tpu.dot_dimension_numbers<[1], [0], [0], [1], [0, 0, 1, 1], [], []>} : vector<8x128xbf16>, vector<128x128xbf16>, vector<8x128xf32> -> vector<8x128xf32>
    %c0_25 = arith.constant 0 : index
    %c0_26 = arith.constant 0 : index
    %c0_27 = arith.constant 0 : index
    %68 = vector.load %arg9[%c0_25, %c0_26, %c0_27] : memref<1x1x128xf32, #tpu.memory_space<vmem>>, vector<1x1x128xf32>
    %69 = vector.shape_cast %68 : vector<1x1x128xf32> to vector<1x128xf32>
    %70 = vector.broadcast %69 : vector<1x128xf32> to vector<8x128xf32>
    %71 = arith.addf %67, %70 : vector<8x128xf32>
    %72 = arith.addf %71, %3 : vector<8x128xf32>
    %c0_28 = arith.constant 0 : index
    %c0_29 = arith.constant 0 : index
    %c0_30 = arith.constant 0 : index
    %73 = vector.load %arg10[%c0_28, %c0_29, %c0_30] : memref<1x1x128xf32, #tpu.memory_space<vmem>>, vector<1x1x128xf32>
    %74 = vector.shape_cast %73 : vector<1x1x128xf32> to vector<1x128xf32>
    %c0_31 = arith.constant 0 : index
    %c0_32 = arith.constant 0 : index
    %c0_33 = arith.constant 0 : index
    %75 = vector.load %arg11[%c0_31, %c0_32, %c0_33] : memref<1x1x128xf32, #tpu.memory_space<vmem>>, vector<1x1x128xf32>
    %76 = vector.shape_cast %75 : vector<1x1x128xf32> to vector<1x128xf32>
    %cst_34 = arith.constant dense<0.000000e+00> : vector<8xf32>
    %77 = vector.multi_reduction <add>, %72, %cst_34 [1] : vector<8x128xf32> to vector<8xf32>
    %78 = vector.shape_cast %77 : vector<8xf32> to vector<8x1xf32>
    %cst_35 = arith.constant 1.280000e+02 : f32
    %79 = vector.broadcast %cst_35 : f32 to vector<8x1xf32>
    %80 = arith.divf %78, %79 : vector<8x1xf32>
    %81 = vector.broadcast %80 : vector<8x1xf32> to vector<8x128xf32>
    %82 = arith.subf %72, %81 : vector<8x128xf32>
    %83 = arith.mulf %82, %82 : vector<8x128xf32>
    %cst_36 = arith.constant dense<0.000000e+00> : vector<8xf32>
    %84 = vector.multi_reduction <add>, %83, %cst_36 [1] : vector<8x128xf32> to vector<8xf32>
    %85 = vector.shape_cast %84 : vector<8xf32> to vector<8x1xf32>
    %cst_37 = arith.constant 1.280000e+02 : f32
    %86 = vector.broadcast %cst_37 : f32 to vector<8x1xf32>
    %87 = arith.divf %85, %86 : vector<8x1xf32>
    %88 = vector.broadcast %80 : vector<8x1xf32> to vector<8x128xf32>
    %89 = arith.subf %72, %88 : vector<8x128xf32>
    %cst_38 = arith.constant 9.99999996E-13 : f32
    %90 = vector.broadcast %cst_38 : f32 to vector<8x1xf32>
    %91 = arith.addf %87, %90 : vector<8x1xf32>
    %92 = math.rsqrt %91 : vector<8x1xf32>
    %93 = vector.broadcast %92 : vector<8x1xf32> to vector<8x128xf32>
    %94 = arith.mulf %89, %93 : vector<8x128xf32>
    %95 = vector.broadcast %74 : vector<1x128xf32> to vector<8x128xf32>
    %96 = arith.mulf %94, %95 : vector<8x128xf32>
    %97 = vector.broadcast %76 : vector<1x128xf32> to vector<8x128xf32>
    %98 = arith.addf %96, %97 : vector<8x128xf32>
    %99 = arith.truncf %98 : vector<8x128xf32> to vector<8x128xbf16>
    %c0_39 = arith.constant 0 : index
    %c0_40 = arith.constant 0 : index
    %c0_41 = arith.constant 0 : index
    %100 = vector.load %arg12[%c0_39, %c0_40, %c0_41] : memref<1x128x512xbf16, #tpu.memory_space<vmem>>, vector<1x128x512xbf16>
    %101 = vector.shape_cast %100 : vector<1x128x512xbf16> to vector<128x512xbf16>
    %cst_42 = arith.constant dense<0.000000e+00> : vector<8x512xf32>
    %102 = tpu.matmul %99, %101, %cst_42 {dimension_numbers = #tpu.dot_dimension_numbers<[1], [0], [0], [1], [0, 0, 1, 1], [], []>} : vector<8x128xbf16>, vector<128x512xbf16>, vector<8x512xf32> -> vector<8x512xf32>
    %c0_43 = arith.constant 0 : index
    %c0_44 = arith.constant 0 : index
    %c0_45 = arith.constant 0 : index
    %103 = vector.load %arg13[%c0_43, %c0_44, %c0_45] : memref<1x1x512xf32, #tpu.memory_space<vmem>>, vector<1x1x512xf32>
    %104 = vector.shape_cast %103 : vector<1x1x512xf32> to vector<1x512xf32>
    %105 = vector.broadcast %104 : vector<1x512xf32> to vector<8x512xf32>
    %106 = arith.addf %102, %105 : vector<8x512xf32>
    %cst_46 = arith.constant 5.000000e-01 : f32
    %107 = vector.broadcast %cst_46 : f32 to vector<8x512xf32>
    %108 = arith.mulf %107, %106 : vector<8x512xf32>
    %cst_47 = arith.constant 0.707106769 : f32
    %109 = vector.broadcast %cst_47 : f32 to vector<8x512xf32>
    %110 = arith.mulf %106, %109 : vector<8x512xf32>
    %111 = math.erf %110 : vector<8x512xf32>
    %cst_48 = arith.constant 1.000000e+00 : f32
    %112 = vector.broadcast %cst_48 : f32 to vector<8x512xf32>
    %113 = arith.addf %112, %111 : vector<8x512xf32>
    %114 = arith.mulf %108, %113 : vector<8x512xf32>
    %115 = arith.truncf %114 : vector<8x512xf32> to vector<8x512xbf16>
    %c0_49 = arith.constant 0 : index
    %c0_50 = arith.constant 0 : index
    %c0_51 = arith.constant 0 : index
    %116 = vector.load %arg14[%c0_49, %c0_50, %c0_51] : memref<1x512x128xbf16, #tpu.memory_space<vmem>>, vector<1x512x128xbf16>
    %117 = vector.shape_cast %116 : vector<1x512x128xbf16> to vector<512x128xbf16>
    %cst_52 = arith.constant dense<0.000000e+00> : vector<8x128xf32>
    %118 = tpu.matmul %115, %117, %cst_52 {dimension_numbers = #tpu.dot_dimension_numbers<[1], [0], [0], [1], [0, 0, 1, 1], [], []>} : vector<8x512xbf16>, vector<512x128xbf16>, vector<8x128xf32> -> vector<8x128xf32>
    %c0_53 = arith.constant 0 : index
    %c0_54 = arith.constant 0 : index
    %c0_55 = arith.constant 0 : index
    %119 = vector.load %arg15[%c0_53, %c0_54, %c0_55] : memref<1x1x128xf32, #tpu.memory_space<vmem>>, vector<1x1x128xf32>
    %120 = vector.shape_cast %119 : vector<1x1x128xf32> to vector<1x128xf32>
    %121 = vector.broadcast %120 : vector<1x128xf32> to vector<8x128xf32>
    %122 = arith.addf %118, %121 : vector<8x128xf32>
    %123 = arith.addf %122, %98 : vector<8x128xf32>
    %c0_56 = arith.constant 0 : index
    %c0_57 = arith.constant 0 : index
    %c0_58 = arith.constant 0 : index
    %124 = vector.load %arg16[%c0_56, %c0_57, %c0_58] : memref<1x1x128xf32, #tpu.memory_space<vmem>>, vector<1x1x128xf32>
    %125 = vector.shape_cast %124 : vector<1x1x128xf32> to vector<1x128xf32>
    %c0_59 = arith.constant 0 : index
    %c0_60 = arith.constant 0 : index
    %c0_61 = arith.constant 0 : index
    %126 = vector.load %arg17[%c0_59, %c0_60, %c0_61] : memref<1x1x128xf32, #tpu.memory_space<vmem>>, vector<1x1x128xf32>
    %127 = vector.shape_cast %126 : vector<1x1x128xf32> to vector<1x128xf32>
    %cst_62 = arith.constant dense<0.000000e+00> : vector<8xf32>
    %128 = vector.multi_reduction <add>, %123, %cst_62 [1] : vector<8x128xf32> to vector<8xf32>
    %129 = vector.shape_cast %128 : vector<8xf32> to vector<8x1xf32>
    %cst_63 = arith.constant 1.280000e+02 : f32
    %130 = vector.broadcast %cst_63 : f32 to vector<8x1xf32>
    %131 = arith.divf %129, %130 : vector<8x1xf32>
    %132 = vector.broadcast %131 : vector<8x1xf32> to vector<8x128xf32>
    %133 = arith.subf %123, %132 : vector<8x128xf32>
    %134 = arith.mulf %133, %133 : vector<8x128xf32>
    %cst_64 = arith.constant dense<0.000000e+00> : vector<8xf32>
    %135 = vector.multi_reduction <add>, %134, %cst_64 [1] : vector<8x128xf32> to vector<8xf32>
    %136 = vector.shape_cast %135 : vector<8xf32> to vector<8x1xf32>
    %cst_65 = arith.constant 1.280000e+02 : f32
    %137 = vector.broadcast %cst_65 : f32 to vector<8x1xf32>
    %138 = arith.divf %136, %137 : vector<8x1xf32>
    %139 = vector.broadcast %131 : vector<8x1xf32> to vector<8x128xf32>
    %140 = arith.subf %123, %139 : vector<8x128xf32>
    %cst_66 = arith.constant 9.99999996E-13 : f32
    %141 = vector.broadcast %cst_66 : f32 to vector<8x1xf32>
    %142 = arith.addf %138, %141 : vector<8x1xf32>
    %143 = math.rsqrt %142 : vector<8x1xf32>
    %144 = vector.broadcast %143 : vector<8x1xf32> to vector<8x128xf32>
    %145 = arith.mulf %140, %144 : vector<8x128xf32>
    %146 = vector.broadcast %125 : vector<1x128xf32> to vector<8x128xf32>
    %147 = arith.mulf %145, %146 : vector<8x128xf32>
    %148 = vector.broadcast %127 : vector<1x128xf32> to vector<8x128xf32>
    %149 = arith.addf %147, %148 : vector<8x128xf32>
    %c0_67 = arith.constant 0 : index
    %c0_68 = arith.constant 0 : index
    %150 = vector.load %arg19[%c0_67, %c0_68] : memref<8x128xf32, #tpu.memory_space<vmem>>, vector<8x128xf32>
    tpu.vector_store %arg19[%c0_67, %c0_68], %149 {strides = array<i32>} : memref<8x128xf32, #tpu.memory_space<vmem>>, vector<8x128xf32>,
    %c1_i32 = arith.constant 1 : i32
    %151 = arith.cmpi eq, %arg1, %c1_i32 : i32
    %152 = arith.extui %151 : i1 to i32
    %c0_i32_69 = arith.constant 0 : i32
    %153 = arith.cmpi ne, %152, %c0_i32_69 : i32
    scf.if %153 {
      %154 = arith.truncf %149 : vector<8x128xf32> to vector<8x128xbf16>
      %c0_70 = arith.constant 0 : index
      %c0_71 = arith.constant 0 : index
      %c0_72 = arith.constant 0 : index
      %155 = vector.load %arg18[%c0_70, %c0_71, %c0_72] : memref<1x8x128xbf16, #tpu.memory_space<vmem>>, vector<1x8x128xbf16>
      %156 = vector.shape_cast %155 : vector<1x8x128xbf16> to vector<8x128xbf16>
      %157 = vector.shape_cast %154 : vector<8x128xbf16> to vector<1x8x128xbf16>
      tpu.vector_store %arg18[%c0_70, %c0_71, %c0_72], %157 {strides = array<i32>} : memref<1x8x128xbf16, #tpu.memory_space<vmem>>, vector<1x8x128xbf16>,
    } else {
    }
    return
  }
  func.func @transform_0(%arg0: i32, %arg1: i32) -> (i32, i32, i32) {
    %c0_i32 = arith.constant 0 : i32
    %c0_i32_0 = arith.constant 0 : i32
    %c0_i32_1 = arith.constant 0 : i32
    return %arg0, %c0_i32, %c0_i32_0 : i32, i32, i32
  }
  func.func @transform_1(%arg0: i32, %arg1: i32) -> (i32, i32, i32) {
    %c0_i32 = arith.constant 0 : i32
    %c0_i32_0 = arith.constant 0 : i32
    %c0_i32_1 = arith.constant 0 : i32
    return %arg0, %c0_i32, %c0_i32_0 : i32, i32, i32
  }
  func.func @transform_2(%arg0: i32, %arg1: i32) -> (i32, i32) {
    %c0_i32 = arith.constant 0 : i32
    %c0_i32_0 = arith.constant 0 : i32
    %c0_i32_1 = arith.constant 0 : i32
    return %c0_i32, %c0_i32_0 : i32, i32
  }
  func.func @transform_3(%arg0: i32, %arg1: i32) -> (i32, i32) {
    %c0_i32 = arith.constant 0 : i32
    %c0_i32_0 = arith.constant 0 : i32
    %c0_i32_1 = arith.constant 0 : i32
    return %c0_i32, %c0_i32_0 : i32, i32
  }
  func.func @transform_4(%arg0: i32, %arg1: i32) -> (i32, i32, i32) {
    %c0_i32 = arith.constant 0 : i32
    %c0_i32_0 = arith.constant 0 : i32
    %c0_i32_1 = arith.constant 0 : i32
    return %arg1, %c0_i32, %c0_i32_0 : i32, i32, i32
  }
  func.func @transform_5(%arg0: i32, %arg1: i32) -> (i32, i32, i32) {
    %c0_i32 = arith.constant 0 : i32
    %c0_i32_0 = arith.constant 0 : i32
    %c0_i32_1 = arith.constant 0 : i32
    return %arg1, %c0_i32, %c0_i32_0 : i32, i32, i32
  }
  func.func @transform_6(%arg0: i32, %arg1: i32) -> (i32, i32, i32) {
    %c0_i32 = arith.constant 0 : i32
    %c0_i32_0 = arith.constant 0 : i32
    %c0_i32_1 = arith.constant 0 : i32
    return %arg1, %c0_i32, %c0_i32_0 : i32, i32, i32
  }
  func.func @transform_7(%arg0: i32, %arg1: i32) -> (i32, i32, i32) {
    %c0_i32 = arith.constant 0 : i32
    %c0_i32_0 = arith.constant 0 : i32
    %c0_i32_1 = arith.constant 0 : i32
    return %arg1, %c0_i32, %c0_i32_0 : i32, i32, i32
  }
  func.func @transform_8(%arg0: i32, %arg1: i32) -> (i32, i32, i32) {
    %c0_i32 = arith.constant 0 : i32
    %c0_i32_0 = arith.constant 0 : i32
    %c0_i32_1 = arith.constant 0 : i32
    return %arg1, %c0_i32, %c0_i32_0 : i32, i32, i32
  }
  func.func @transform_9(%arg0: i32, %arg1: i32) -> (i32, i32, i32) {
    %c0_i32 = arith.constant 0 : i32
    %c0_i32_0 = arith.constant 0 : i32
    %c0_i32_1 = arith.constant 0 : i32
    return %arg1, %c0_i32, %c0_i32_0 : i32, i32, i32
  }
  func.func @transform_10(%arg0: i32, %arg1: i32) -> (i32, i32, i32) {
    %c0_i32 = arith.constant 0 : i32
    %c0_i32_0 = arith.constant 0 : i32
    %c0_i32_1 = arith.constant 0 : i32
    return %arg1, %c0_i32, %c0_i32_0 : i32, i32, i32
  }
  func.func @transform_11(%arg0: i32, %arg1: i32) -> (i32, i32, i32) {
    %c0_i32 = arith.constant 0 : i32
    %c0_i32_0 = arith.constant 0 : i32
    %c0_i32_1 = arith.constant 0 : i32
    return %arg1, %c0_i32, %c0_i32_0 : i32, i32, i32
  }
  func.func @transform_12(%arg0: i32, %arg1: i32) -> (i32, i32, i32) {
    %c0_i32 = arith.constant 0 : i32
    %c0_i32_0 = arith.constant 0 : i32
    %c0_i32_1 = arith.constant 0 : i32
    return %arg1, %c0_i32, %c0_i32_0 : i32, i32, i32
  }
  func.func @transform_13(%arg0: i32, %arg1: i32) -> (i32, i32, i32) {
    %c0_i32 = arith.constant 0 : i32
    %c0_i32_0 = arith.constant 0 : i32
    %c0_i32_1 = arith.constant 0 : i32
    return %arg1, %c0_i32, %c0_i32_0 : i32, i32, i32
  }
  func.func @transform_14(%arg0: i32, %arg1: i32) -> (i32, i32, i32) {
    %c0_i32 = arith.constant 0 : i32
    %c0_i32_0 = arith.constant 0 : i32
    %c0_i32_1 = arith.constant 0 : i32
    return %arg1, %c0_i32, %c0_i32_0 : i32, i32, i32
  }
  func.func @transform_15(%arg0: i32, %arg1: i32) -> (i32, i32, i32) {
    %c0_i32 = arith.constant 0 : i32
    %c0_i32_0 = arith.constant 0 : i32
    %c0_i32_1 = arith.constant 0 : i32
    return %arg1, %c0_i32, %c0_i32_0 : i32, i32, i32
  }
  func.func @transform_16(%arg0: i32, %arg1: i32) -> (i32, i32, i32) {
    %c0_i32 = arith.constant 0 : i32
    %c0_i32_0 = arith.constant 0 : i32
    %c0_i32_1 = arith.constant 0 : i32
    return %arg0, %c0_i32, %c0_i32_0 : i32, i32, i32
  }
}

</mosaic_0001>

<bundles_post_ra>
// kernel: _lambda_.1
= control target key start
LH: loop header
LB: loop body
LE: loop exit
PB: predicated region body
PF: predicated region fallthrough
CT: control target
= control target key end

     0   :  { %s3617_s0 = inlined_call_operand.vmem [shape: f32[2,8,128], index: 0, kind: input, shape index: {}]   ;;  %s3618_s1 = inlined_call_operand.vmem [shape: f32[2,1,8], index: 1, kind: input, shape index: {}]   ;;  %s3619_s2 = inlined_call_operand.vmem [shape: f32[1,128], index: 2, kind: input, shape index: {}]   ;;  %s3620_s3 = inlined_call_operand.vmem [shape: f32[1,128], index: 3, kind: input, shape index: {}]   ;;  %s3621_s4 = inlined_call_operand.hbm [shape: bf16[2,128,384], index: 4, kind: input, shape index: {}]   ;;  %s3622_s5 = inlined_call_operand.vmem [shape: f32[2,1,384], index: 5, kind: input, shape index: {}]   ;;  %s3623_s6 = inlined_call_operand.vmem [shape: bf16[2,128,128], index: 6, kind: input, shape index: {}]   ;;  %s3624_s7 = inlined_call_operand.vmem [shape: f32[2,1,128], index: 7, kind: input, shape index: {}]   ;;  %s3625_s8 = inlined_call_operand.vmem [shape: f32[2,1,128], index: 8, kind: input, shape index: {}]   ;;  %s3626_s9 = inlined_call_operand.vmem [shape: f32[2,1,128], index: 9, kind: input, shape index: {}]   ;;  %s3627_s10 = inlined_call_operand.hbm [shape: bf16[2,128,512], index: 10, kind: input, shape index: {}]   ;;  %s3628_s11 = inlined_call_operand.vmem [shape: f32[2,1,512], index: 11, kind: input, shape index: {}]   ;;  %s3629_s12 = inlined_call_operand.hbm [shape: bf16[2,512,128], index: 12, kind: input, shape index: {}]   ;;  %s3630_s13 = inlined_call_operand.vmem [shape: f32[2,1,128], index: 13, kind: input, shape index: {}]   ;;  %s3631_s14 = inlined_call_operand.vmem [shape: f32[2,1,128], index: 14, kind: input, shape index: {}]   ;;  %s3632_s15 = inlined_call_operand.vmem [shape: f32[2,1,128], index: 15, kind: input, shape index: {}]   ;;  %s3633_s16 = inlined_call_operand.vmem [shape: bf16[2,8,128], index: 16, kind: output, shape index: {}]  }
   0x1   :  { %3642 = sst [smem:[#allocation19_spill]] %s3617_s0 }
   0x2   :  { %3643 = sst [smem:[#allocation20_spill]] %s3619_s2 }
   0x3   :  { %3644 = sst [smem:[#allocation21_spill]] %s3620_s3 }
   0x4   :  { %3645 = sst [smem:[#allocation22_spill]] %s3621_s4 }
   0x5   :  { %3646 = sst [smem:[#allocation23_spill]] %s3622_s5 }
   0x6   :  { %3647 = sst [smem:[#allocation24_spill]] %s3623_s6 }
   0x7   :  { %3648 = sst [smem:[#allocation25_spill]] %s3624_s7 }
   0x8   :  { %3649 = sst [smem:[#allocation26_spill]] %s3625_s8 }
   0x9   :  { %3650 = sst [smem:[#allocation27_spill]] %s3626_s9 }
   0xa   :  { %3651 = sst [smem:[#allocation28_spill]] %s3627_s10 }
   0xb   :  { %3652 = sst [smem:[#allocation29_spill]] %s3628_s11 }
   0xc   :  { %3653 = sst [smem:[#allocation30_spill]] %s3629_s12 }
   0xd   :  { %3654 = sst [smem:[#allocation31_spill]] %s3630_s13 }
   0xe   :  { %3655 = sst [smem:[#allocation32_spill]] %s3631_s14 }
   0xf   :  { %3656 = sst [smem:[#allocation33_spill]] %s3632_s15 }
  0x10   :  { %3657 = sst [smem:[#allocation34_spill]] %s3633_s16 }
  0x11   :  { %21 = vsyncpa [#allocation4], 0 }
  0x12   :  { %23 = vsyncpa [#allocation4 + $0x1], 0 }
  0x13   :  { %24 = vsyncpa [#allocation6], 0 }
  0x14   :  { %26 = vsyncpa [#allocation6 + $0x1], 0  ;;  %s3162_s21 = smov 0   ;;  %s3164_s22 = smov 0  }
  0x15   :  { %s3166_s23 = smov 0   ;;  %s3168_s24 = smov 0  }
  0x16   :  { %s3170_s25 = smov 0   ;;  %s3172_s26 = smov 0  }
  0x17   :  { %s3174_s27 = smov 0   ;;  %s3176_s28 = smov 0  }
  0x18 LB: > { %3658 = sst [smem:[#allocation10_spill]] %s3038_s22  ;;  %s3636_s29 = sadd.s32 4294967295, %s3062_s28   ;;  %s3062_s28 = sphi %s3176_s28, %s32_s28   ;;  %s3058_s27 = sphi %s3174_s27, %s3705_s27   ;;  %s3054_s26 = sphi %s3172_s26, %s3704_s26   ;;  %s3050_s25 = sphi %s3170_s25, %s3703_s25   ;;  %s3046_s24 = sphi %s3168_s24, %s3702_s24   ;;  %s3042_s23 = sphi %s3166_s23, %s3701_s23   ;;  %s3038_s22 = sphi %s3164_s22, %s3700_s22   ;;  %s3034_s21 = sphi %s3162_s21, %s3699_s21  }
  0x19   : > { %3659 = sst [smem:[#allocation11_spill]] %s3042_s23  ;;  %s41_s30 = sadd.s32 1, %s3054_s26 }
  0x1a   : > { %3660 = sst [smem:[#allocation12_spill]] %s3054_s26  ;;  %p42_p0 = scmp.ge.s32.totalorder %s41_s30, 2 }
  0x1b   : > { %3661 = sst [smem:[#allocation13_spill]] %s3058_s27  ;;  %s44_s0 = sadd.s32 1, %s3058_s27 }
  0x1c   : > { %3662 = sst [smem:[#allocation14_spill]] %s3062_s28  ;;  %s145_s17 = sadd.s32 1, %s3042_s23 }
  0x1d   : > { %p152_p1 = scmp.ne.s32.totalorder %s3042_s23, %s3038_s22  ;;  %s3707_s30 = smov (%p42_p0, %s41_s30), 0 }
  0x1e   : > { %3663 = sst [smem:[#allocation15_spill]] %s3707_s30  ;;  %s3709_s0 = smov (!%p42_p0, %s44_s0), %s3058_s27 }
  0x1f   : > { %s142_s18 = ssub.s32 %s3054_s26, %s3707_s30  ;;  %p153_p2 = scmp.eq.s32.totalorder %s3062_s28, 0 }
  0x20   : > { %p46_p3 = scmp.ge.s32.totalorder %s3709_s0, 2  ;;  %p143_p4 = scmp.eq.s32.totalorder %s142_s18, 0 }
  0x21   : > { %p154_p5 = por %p153_p2, %p152_p1  ;;  %p158_p6 = scmp.ne.s32.totalorder %s3038_s22, %s3034_s21 }
  0x22   : > { %s3711_s0 = smov (%p46_p3, %s3709_s0), 0  ;;  %p159_p7 = scmp.eq.s32.totalorder %s3636_s29, 0 }
  0x23   : > { %3664 = sst [smem:[#allocation16_spill]] %s3711_s0  ;;  %p2691_p8 = scmp.lt.s32.totalorder %s3062_s28, 4 }
  0x24   : > { %s3216_s19 = scalar_select %p143_p4, %s3042_s23, %s145_s17  }
  0x25   : > { %s3222_s20 = sand.u32 1, %s3042_s23   ;;  %p3224_p9 = por %p159_p7, %p158_p6 }
  0x26   : > { %3665 = sst [smem:[#allocation17_spill]] %s3216_s19  ;;  %s567_s30 = sand.u32 1, %s3062_s28  }
  0x27   : > { %p3229_p10 = pnand %p2691_p8, %p154_p5  ;;  %s2407_s21 = sshll.u32 %s3222_s20, 8 }
  0x28   : > { %s2534_s17 = sshll.u32 %s3054_s26, 12  ;;  %s3668_s10 = sld [smem:[#allocation28_spill]] }
  0x29   : > { %s571_s19 = scalar_lea.vmem [#allocation5], %s2407_s21  ;;  %s3238_s2 = scalar_lea.sflag [#allocation6], %s567_s30 }
  0x2a   : > { %s578_s23 = sshll.u32 %s571_s19, 4  ;;  %p2910_p11 = pneg %p3229_p10  ;;  %s579_s23 = int_to_ptr.vmem [resolvable:$true] %s578_s23 }
  0x2b   : > { %s2921_s16 = scalar_lea.vmem %s579_s23, 4096  ;;  %s3064_s15 = smov [#allocation5]  }
  0x2c   : > { %p2922_p12 = scmp.ne.s32.totalorder %s579_s23, %s2921_s16  ;;  %s2926_s14 = sshll.u32 %s3064_s15, 4  ;;  %s2927_s14 = int_to_ptr.vmem [resolvable:$false] %s2926_s14 }
  0x2d   : > { %s2928_s11 = scalar_lea.vmem %s2927_s14, 8192  ;;  %p2929_p1 = scmp.lt.s32.totalorder %s579_s23, %s2927_s14 }
  0x2e   : > { %s577_s29 = scalar_lea.hbm %s3668_s10, %s2534_s17  ;;  %p2924_p13 = pnand %p2922_p12, %p2910_p11 }
  0x2f   : > { %p2930_p2 = scmp.lt.s32.totalorder %s2928_s11, %s2921_s16 }
  0x30   : > { %p2925_p0 = pneg %p2924_p13 }
  0x31   : > { %p2931_p3 = por %p2930_p2, %p2929_p1 }
  0x33   : > { %p2932_p4 = pnand %p2931_p3, %p2925_p0 }
  0x35   : > { %2935 = shalt.err (!%p2932_p4)
}
  0x36   : > { %s3065_s0 = smov 256   ;;  %s3066_s30 = smov 16  }
  0x37   : > { %2687 = dma.hbm_to_vmem [thread:$0]  (!%p3229_p10), %s577_s29, 4096, %s579_s23, %s3238_s2, %s3065_s0, %s3065_s0, %s3066_s30  }
  0x38   : > { %s3669_s12 = sld [smem:[#allocation30_spill]]  ;;  %s599_s11 = scalar_lea.vmem [#allocation7], %s2407_s21 }
  0x39   : > { %s606_s14 = sshll.u32 %s599_s11, 4  ;;  %p2413_p5 = scmp.ge.s32.totalorder %s3062_s28, 1  ;;  %s3253_s14 = int_to_ptr.vmem [resolvable:$true] %s606_s14 }
  0x3a   : > { %p632_p6 = scmp.lt.s32.totalorder %s3062_s28, 5  ;;  %s2671_s10 = smul.u32 192, %s3222_s20 }
  0x3b   : > { %s2672_s13 = smul.u32 3072, %s3054_s26  ;;  %s3671_s4 = sld [smem:[#allocation22_spill]] }
  0x3c   : > { %p3257_p7 = pnand %p2413_p5, %p632_p6  ;;  %s517_s0 = scalar_lea.vmem [#allocation3], %s2671_s10 }
  0x3d   : > { %s514_s30 = scalar_lea.sflag [#allocation4], %s3222_s20  ;;  %s3067_s19 = smov [#allocation3]  }
  0x3e   : > { %s3251_s18 = scalar_lea.hbm %s3669_s12, %s2534_s17  ;;  %s524_s17 = sshll.u32 %s517_s0, 4  ;;  %s525_s17 = int_to_ptr.vmem [resolvable:$true] %s524_s17 }
  0x3f   : > { %s2949_s21 = scalar_lea.vmem %s525_s17, 3072  ;;  %s2954_s15 = sshll.u32 %s3067_s19, 4  ;;  %s2955_s15 = int_to_ptr.vmem [resolvable:$false] %s2954_s15 }
  0x40   : > { %p2950_p8 = scmp.ne.s32.totalorder %s525_s17, %s2949_s21  ;;  %s2956_s11 = scalar_lea.vmem %s2955_s15, 6144 }
  0x41   : > { %s523_s29 = scalar_lea.hbm %s3671_s4, %s2672_s13  ;;  %p2957_p0 = scmp.lt.s32.totalorder %s525_s17, %s2955_s15 }
  0x42   : > { %p2952_p12 = pnand %p2950_p8, %p2910_p11  ;;  %p2958_p1 = scmp.lt.s32.totalorder %s2956_s11, %s2949_s21 }
  0x44   : > { %p2953_p13 = pneg %p2952_p12  ;;  %p2959_p2 = por %p2958_p1, %p2957_p0 }
  0x46   : > { %p2960_p3 = pnand %p2959_p2, %p2953_p13 }
  0x48   : > { %2963 = shalt.err (!%p2960_p3)
}
  0x49   : > { %s3068_s9 = smov 192   ;;  %s3069_s10 = smov 12  }
  0x4a   : > { %2684 = dma.hbm_to_vmem [thread:$0]  (!%p3229_p10), %s523_s29, 3072, %s525_s17, %s514_s30, %s3068_s9, %s3068_s9, %s3069_s10  }
  0x4b   : > { %s2977_s13 = scalar_lea.vmem %s3253_s14, 4096  ;;  %s3070_s20 = smov [#allocation7]  }
  0x4c   : > { %p2978_p4 = scmp.ne.s32.totalorder %s3253_s14, %s2977_s13  ;;  %s2982_s23 = sshll.u32 %s3070_s20, 4  ;;  %s2983_s23 = int_to_ptr.vmem [resolvable:$false] %s2982_s23 }
  0x4d   : > { %s2984_s0 = scalar_lea.vmem %s2983_s23, 8192  ;;  %p2985_p8 = scmp.lt.s32.totalorder %s3253_s14, %s2983_s23 }
  0x4e   : > { %p2980_p5 = pnand %p2978_p4, %p2910_p11  ;;  %p2986_p12 = scmp.lt.s32.totalorder %s2984_s0, %s2977_s13 }
  0x50   : > { %p2981_p6 = pneg %p2980_p5  ;;  %p2987_p13 = por %p2986_p12, %p2985_p8 }
  0x52   : > { %p2988_p0 = pnand %p2987_p13, %p2981_p6 }
  0x54   : > { %2991 = shalt.err (!%p2988_p0)
}
  0x55   : > { %s3071_s21 = smov 64   ;;  %s3072_s29 = smov 4  }
  0x56   : > { %2690 = dma.hbm_to_vmem [thread:$0]  (!%p3229_p10), %s3251_s18, 4096, %s3253_s14, %s3238_s2, %s3071_s21, %s3071_s21, %s3072_s29  }
  0x57   : > { %636 = sbr.rel (%p3257_p7) target bundleno = 3247 (0xcaf), region = 84 }
  0x5c   : > { %s3286_s17 = sand.u32 1, %s3038_s22  }
  0x5d   : > { %s2673_s30 = smul.u32 192, %s3286_s17  ;;  %s639_s19 = scalar_lea.sflag [#allocation4], %s3286_s17 }
  0x5f   : > { %s3290_s15 = scalar_lea.vmem [#allocation3], %s2673_s30 }
  0x60   : > { %3025 = dma.done.wait (%p3224_p9), %s639_s19, 3072  }
  0x61   : > { %3027 = vsyncadd (%p3224_p9), %s639_s19, 4294964224  ;;  %s3672_s2 = sadd.s32 4294967295, %s3062_s28   ;;  %s2414_s18 = sshll.u32 %s3286_s17, 8 }
  0x62   : > { %s647_s27 = sand.u32 1, %s3672_s2   ;;  %s3299_s16 = scalar_lea.vmem [#allocation5], %s2414_s18 }
  0x63   : > { %s648_s14 = scalar_lea.sflag [#allocation6], %s647_s27  ;;  %3673 = sst [smem:[#allocation18_spill]] %s3299_s16 }
  0x64   : > { %3029 = dma.done.wait (%p3224_p9), %s648_s14, 8192  }
  0x65   : > { %3031 = vsyncadd (%p3224_p9), %s648_s14, 4294959104  ;;  %p756_p10 = scmp.lt.s32.totalorder %s3050_s25, 1  ;;  %p763_p11 = scmp.lt.s32.totalorder %s3046_s24, 1 }
  0x66   : > { %s3674_s0 = sld [smem:[#allocation19_spill]]  ;;  %p2421_p9 = scmp.ne.s32.totalorder %s3046_s24, 0 }
  0x67   : > { %s3713_s25 = smov (!%p756_p10, %s3050_s25), 1  ;;  %s3676_s5 = sld [smem:[#allocation23_spill]] }
  0x68   : > { %s3311_s11 = scalar_select %p763_p11, %s3046_s24, 1 }
  0x69   : > { %s2416_s3 = sshll.u32 %s3713_s25, 3  ;;  %s3677_s6 = sld [smem:[#allocation24_spill]] }
  0x6a   : > { %s2674_s29 = smul.u32 3, %s3311_s11  ;;  %s2536_s17 = sshll.u32 %s3311_s11, 6 }
  0x6b   : > { %s2419_s30 = sshll.u32 %s3311_s11, 2  ;;  %s3680_s28 = sld [smem:[#allocation31_spill]] }
  0x6c   : > { %s759_s21 = scalar_lea.vmem %s3674_s0, %s2416_s3  ;;  %s3683_s3 = sld [smem:[#allocation33_spill]] }
  0x6d   : > { %s3330_s4 = scalar_lea.vmem %s3676_s5, %s2674_s29  ;;  %s3681_s5 = sld [smem:[#allocation29_spill]] }
  0x6e   : > { %s2420_s20 = sshll.u32 %s3713_s25, 2  ;;  %s3684_s22 = sld [smem:[#allocation34_spill]] }
  0x6f   : > { %s3335_s9 = scalar_lea.vmem %s3677_s6, %s2536_s17  ;;  %s3682_s17 = sld [smem:[#allocation32_spill]] }
  0x70   : > { %s3685_s2 = sld [smem:[#allocation20_spill]] (!%p2421_p9) }
  0x71   : > { %s787_s27 = scalar_lea.vmem %s3680_s28, %s3311_s11  ;;  %s3369_s28 = scalar_lea.vmem [#allocation7], %s2414_s18 }
  0x72   : > { %s793_s8 = scalar_lea.vmem %s3683_s3, %s3311_s11  ;;  %802 = sbr.rel (%p2421_p9) target bundleno = 427 (0x1ab), region = 100 }
  0x73   : > { %s3353_s7 = scalar_lea.vmem %s3681_s5, %s2419_s30  ;;  %s3686_s30 = sld [smem:[#allocation21_spill]] (!%p2421_p9) }
  0x74   : > { %s3367_s16 = scalar_lea.vmem %s3684_s22, %s2420_s20 }
  0x75   : > { %s790_s6 = scalar_lea.vmem %s3682_s17, %s3311_s11 }
  0x77   : > { %v803_v0 = vld [vmem:[%s759_s21] sm:$0xff] }
  0x78   : > { %806 = vadd.xlane.f32.xlu0 %v803_v0  ;;  %v2422_v9 = vld [vmem:[%s3685_s2] ss:$0 sm:$0xff] }
  0x79   : > { %v2423_v11 = vld [vmem:[%s3686_s30] ss:$0 sm:$0xff] }
 0x101   : > { %v807_v1 = vpop.xlane.xlu0 %806 }
 0x102   : > { %v809_v2 = vmul.f32 0.0078125, %v807_v1 }
 0x104   : > { %v810_v3 = vsub.f32 %v803_v0, %v809_v2 }
 0x106   : > { %v811_v4 = vmul.f32 %v810_v3, %v810_v3 }
 0x108   : > { %812 = vadd.xlane.f32.xlu0 %v811_v4 }
 0x191   : > { %v813_v5 = vpop.xlane.xlu0 %812 }
 0x192   : > { %v814_v6 = vmul.f32 0.0078125, %v813_v5 }
 0x194   : > { %v815_v7 = vadd.f32 1e-12, %v814_v6 }
 0x196   : > { %2766 = vrsqrt.f32 %v815_v7 }
 0x1a3   : > { %v2767_v8 = vpop.eup %2766 }
 0x1a4   : > { %v817_v10 = vmul.f32 %v2767_v8, %v810_v3 }
 0x1a6   : > { %v824_v12 = vmul.f32 %v2422_v9, %v817_v10 }
 0x1a8   : > { %v831_v13 = vadd.f32 %v2423_v11, %v824_v12 }
 0x1aa   : > { %832 = vst [vmem:[#allocation2] sm:$0xff] %v831_v13 }
 0x1ab PF: > { %v2768_v14 = vld [vmem:[%s3290_s15 + $0xac] ss:$12 sps:$4 sm:$0xff]   ;;  %v2770_v15 = vld [vmem:[%s3290_s15 + $0xa8] ss:$12 sps:$4 sm:$0xff]   ;;  %v3073_v16 = vmov 0   ;;  %v3074_v17 = vmov 0.0   ;;  %v869_v42 = vlaneseq  ;;  %s3687_s19 = scalar_lea.vmem %s3618_s1, %s3713_s25 }
 0x1ac   : > { %1044 = vmatprep.mubr.bf16.mxu0 %v3073_v16  ;;  %2607 = vmatprep.subr.bf16.mxu1 %v3074_v17  ;;  %v2771_v18 = vld [vmem:[%s3290_s15 + $0x94] ss:$12 sps:$4 sm:$0xff]   ;;  %v2773_v19 = vld [vmem:[%s3290_s15 + $0x90] ss:$12 sps:$4 sm:$0xff]   ;;  %v2776_v21 = vld [vmem:[%s3290_s15 + $0x78] ss:$12 sps:$4 sm:$0xff]  }
 0x1ad   : > { %1012 = vmatprep.subr.bf16.mxu0 %v2768_v14  ;;  %v2774_v20 = vld [vmem:[%s3290_s15 + $0x7c] ss:$12 sps:$4 sm:$0xff]   ;;  %v2777_v22 = vld [vmem:[%s3290_s15 + $0x64] ss:$12 sps:$4 sm:$0xff]   ;;  %v2779_v23 = vld [vmem:[%s3290_s15 + $0x60] ss:$12 sps:$4 sm:$0xff]  }
 0x1ae   : > { %1013 = vmatpush1.bf16.msra.mxu0 %v2770_v15  ;;  %v2792_v24 = vld [vmem:[%s3290_s15 + $0xb0] ss:$12 sps:$4 sm:$0xff]   ;;  %v2780_v25 = vld [vmem:[%s3290_s15 + $0x4c] ss:$12 sps:$4 sm:$0xff]   ;;  %v2782_v27 = vld [vmem:[%s3290_s15 + $0x48] ss:$12 sps:$4 sm:$0xff]  }
 0x1af   : > { %1014 = vmatprep.subr.bf16.mxu0 %v2771_v18  ;;  %2608 = vmatpush3.bf16.msra.mxu1 %v2792_v24  ;;  %v2793_v26 = vld [vmem:[%s3290_s15 + $0x98] ss:$12 sps:$4 sm:$0xff]   ;;  %v2783_v28 = vld [vmem:[%s3290_s15 + $0x34] ss:$12 sps:$4 sm:$0xff]   ;;  %v2785_v29 = vld [vmem:[%s3290_s15 + $0x30] ss:$12 sps:$4 sm:$0xff]  }
 0x1b0   : > { %2609 = vmatprep.subr.bf16.mxu1 %v3074_v17  ;;  %v2794_v30 = vld [vmem:[%s3290_s15 + $0x80] ss:$12 sps:$4 sm:$0xff]   ;;  %v2786_v31 = vld [vmem:[%s3290_s15 + $0x1c] ss:$12 sps:$4 sm:$0xff]   ;;  %v2788_v33 = vld [vmem:[%s3290_s15 + $0x18] ss:$12 sps:$4 sm:$0xff]  }
 0x1b1   : > { %v2795_v32 = vld [vmem:[%s3290_s15 + $0x68] ss:$12 sps:$4 sm:$0xff]   ;;  %v2789_v34 = vld [vmem:[%s3290_s15 + $0x4] ss:$12 sps:$4 sm:$0xff]   ;;  %v2791_v36 = vld [vmem:[%s3290_s15] ss:$12 sps:$4 sm:$0xff]  }
 0x1b2   : > { %1015 = vmatpush1.bf16.msra.mxu0 %v2773_v19  ;;  %v2796_v35 = vld [vmem:[%s3290_s15 + $0x50] ss:$12 sps:$4 sm:$0xff]   ;;  %v2797_v38 = vld [vmem:[%s3290_s15 + $0x38] ss:$12 sps:$4 sm:$0xff]   ;;  %v2798_v40 = vld [vmem:[%s3290_s15 + $0x20] ss:$12 sps:$4 sm:$0xff]  }
 0x1b3   : > { %1016 = vmatprep.subr.bf16.mxu0 %v2774_v20  ;;  %2610 = vmatpush3.bf16.msra.mxu1 %v2793_v26  ;;  %v3404_v37 = vld [vmem:[#allocation2] sm:$0xff]  ;;  %v2799_v41 = vld [vmem:[%s3290_s15 + $0x8] ss:$12 sps:$4 sm:$0xff]   ;;  %vm3075_vm0 = vmmov 0   ;;  %v3423_v43 = vshrl.u32 %v869_v42, 7  ;;  %vm1097_vm1 = vcmask 523264  }
 0x1b4   : > { %2611 = vmatprep.subr.bf16.mxu1 %v3074_v17  ;;  %v834_v39 = vpack.c.bf16 %v3404_v37, %v3404_v37  ;;  %2623 = vmatprep.mubr.msk.bf16.mxu1 %vm3075_vm0, %v3074_v17  ;;  %v867_v46 = vld [vmem:[%s3330_s4] sm:$0x7]  ;;  %s3076_s15 = smov 64   ;;  %vm1168_vm2 = vcmask 1043456   ;;  %vm1152_vm3 = vcmask 64512   ;;  %s3688_s25 = sld [smem:[#allocation18_spill]] }
 0x1b5   : > { %v875_v44 = vsub.s32 1, %v3423_v43  ;;  %v871_v45 = vsub.s32 0, %v3423_v43  ;;  %v879_v58 = vsub.s32 2, %v3423_v43  ;;  %v2449_v4 = vld [vmem:[%s3687_s19] ss:$0 sm:$0xff]  ;;  %s3689_s14 = sld [smem:[#allocation25_spill]] }
 0x1b6   : > { %1017 = vmatpush1.bf16.msra.mxu0 %v2776_v21  ;;  %s3691_s13 = sld [smem:[#allocation26_spill]]  ;;  %p2531_p7 = scmp.ne.s32.totalorder %s3046_s24, 1 }
 0x1b7   : > { %1018 = vmatprep.subr.bf16.mxu0 %v2777_v22  ;;  %2612 = vmatpush3.bf16.msra.mxu1 %v2794_v30  ;;  %v876_v47 = vrot.slane %v867_v46, %v875_v44  ;;  %v872_v49 = vrot.slane %v867_v46, %v871_v45  ;;  %v880_v59 = vrot.slane %v867_v46, %v879_v58  ;;  %s3693_s0 = sld [smem:[#allocation27_spill]] }
 0x1b8   : > { %2613 = vmatprep.subr.bf16.mxu1 %v3074_v17 }
 0x1ba   : > { %1019 = vmatpush1.bf16.msra.mxu0 %v2779_v23 }
 0x1bb   : > { %1020 = vmatprep.subr.bf16.mxu0 %v2780_v25  ;;  %2614 = vmatpush3.bf16.msra.mxu1 %v2795_v32  ;;  %s3690_s12 = scalar_lea.vmem %s3689_s14, %s3311_s11 }
 0x1bc   : > { %2615 = vmatprep.subr.bf16.mxu1 %v3074_v17  ;;  %s3692_s10 = scalar_lea.vmem %s3691_s13, %s3311_s11 }
 0x1bd   : > { %s3694_s5 = scalar_lea.vmem %s3693_s0, %s3311_s11 }
 0x1be   : > { %1021 = vmatpush1.bf16.msra.mxu0 %v2782_v27 }
 0x1bf   : > { %1022 = vmatprep.subr.bf16.mxu0 %v2783_v28  ;;  %2616 = vmatpush3.bf16.msra.mxu1 %v2796_v35 }
 0x1c0   : > { %2617 = vmatprep.subr.bf16.mxu1 %v3074_v17 }
 0x1c2   : > { %1023 = vmatpush1.bf16.msra.mxu0 %v2785_v29 }
 0x1c3   : > { %1024 = vmatprep.subr.bf16.mxu0 %v2786_v31  ;;  %2618 = vmatpush3.bf16.msra.mxu1 %v2797_v38 }
 0x1c4   : > { %2619 = vmatprep.subr.bf16.mxu1 %v3074_v17 }
 0x1c6   : > { %1025 = vmatpush1.bf16.msra.mxu0 %v2788_v33 }
 0x1c7   : > { %1026 = vmatprep.subr.bf16.mxu0 %v2789_v34  ;;  %2620 = vmatpush3.bf16.msra.mxu1 %v2798_v40 }
 0x1c8   : > { %2621 = vmatprep.subr.bf16.mxu1 %v3074_v17 }
 0x1ca   : > { %1027 = vmatpush1.bf16.msra.mxu0 %v2791_v36 }
 0x1cb   : > { %2651 = vmatprep.subr.bf16.mxu0 %v3074_v17  ;;  %2622 = vmatpush3.bf16.msra.mxu1 %v2799_v41 }
 0x1cc   : > { %2627 = vmatprep.subr.bf16.mxu1 %v3074_v17 }
 0x1cd   : > { %1045 = vmatmul.mubr.bf16.vlgmr.msra.gmra.mxu0 %v834_v39 }
 0x1ce   : > { %2667 = vmatprep.mubr.msk.bf16.mxu0 %vm3075_vm0, %v3074_v17  ;;  %2624 = vmatmul.mubr.bf16.vlgmr.msra.gmra.mxu1 %v834_v39 }
 0x1cf   : > { %2629 = vmatprep.mubr.msk.bf16.mxu1 %vm3075_vm0, %v3074_v17 }
 0x28d   : > { %v1046_v48 = vpop.f32.mrf.mxu0 }
 0x28e   : > { %v1047_v53 = vadd.f32 %v1046_v48, %v872_v49  ;;  %v1087_v60 = vpop.f32.mrf.mxu1 }
 0x28f   : > { %v1048_v50 = vpop.f32.mrf.mxu0  ;;  %v1088_v61 = vadd.f32 %v1087_v60, %v880_v59  ;;  %v2807_v59 = vld [vmem:[%s3335_s9] sm:$0xff]  }
 0x290   : > { %v1049_v51 = vadd.f32 %v1048_v50, %v876_v47  ;;  %v1094_v57 = vpack.c.bf16 %v1047_v53, %v1047_v53  ;;  %v2625_v62 = vpop.f32.mrf.mxu1  ;;  %v2802_v53 = vld [vmem:[%s3335_s9 + $0x28] sm:$0xff]  }
 0x291   : > { %v1050_v52 = vpop.f32.mrf.mxu0  ;;  %v1096_v63 = vpack.c.bf16 %v1088_v61, %v1088_v61 }
 0x292   : > { %v1095_v54 = vpack.c.bf16 %v1049_v51, %v1049_v51  ;;  %v1090_v0 = vpop.f32.mrf.mxu1  ;;  %v2800_v51 = vld [vmem:[%s3335_s9 + $0x38] sm:$0xff]   ;;  %v2801_v52 = vld [vmem:[%s3335_s9 + $0x30] sm:$0xff]  }
 0x293   : > { %v1051_v55 = vpop.f32.mrf.mxu0  ;;  %v1170_v1 = vsel %vm1168_vm2, %v1096_v63, 0  ;;  %2652 = vmatpush3.bf16.msra.mxu0 %v2800_v51 }
 0x294   : > { %v1102_v56 = vsel %vm1097_vm1, %v1095_v54, 0  ;;  %1216 = vrot.lane.b32.xlu1 %v1095_v54, %s3076_s15  ;;  %v2626_v2 = vpop.f32.mrf.mxu1  ;;  %2653 = vmatprep.subr.bf16.mxu0 %v3074_v17  ;;  %v2803_v54 = vld [vmem:[%s3335_s9 + $0x20] sm:$0xff]   ;;  %v2804_v55 = vld [vmem:[%s3335_s9 + $0x18] sm:$0xff]  }
 0x295   : > { %2628 = vmatpush3.bf16.xpose.msra.mxu1 %v1102_v56  ;;  %v2805_v56 = vld [vmem:[%s3335_s9 + $0x10] sm:$0xff]  }
 0x296   : > { %2633 = vmatprep.subr.bf16.mxu1 %v3074_v17 }
 0x297   : > { %2654 = vmatpush3.bf16.msra.mxu0 %v2801_v52 }
 0x298   : > { %1213 = vrot.lane.b32.xlu1 %v1094_v57, %s3076_s15  ;;  %2655 = vmatprep.subr.bf16.mxu0 %v3074_v17 }
 0x29b   : > { %2656 = vmatpush3.bf16.msra.mxu0 %v2802_v53 }
 0x29c   : > { %2630 = vmatmul.mubr.msk.bf16.vlgmr.msra.gmra.mxu1 %vm1097_vm1, %v1094_v57  ;;  %2657 = vmatprep.subr.bf16.mxu0 %v3074_v17  ;;  %v2806_v57 = vld [vmem:[%s3335_s9 + $0x8] sm:$0xff]  }
 0x29d   : > { %2635 = vmatprep.mubr.msk.bf16.mxu1 %vm3075_vm0, %v3074_v17  ;;  %2634 = vmatpush3.bf16.msra.mxu1 %v1170_v1 }
 0x29e   : > { %2639 = vmatprep.subr.bf16.mxu1 %v3074_v17 }
 0x29f   : > { %2658 = vmatpush3.bf16.msra.mxu0 %v2803_v54 }
 0x2a0   : > { %2659 = vmatprep.subr.bf16.mxu0 %v3074_v17 }
 0x2a3   : > { %2660 = vmatpush3.bf16.msra.mxu0 %v2804_v55  ;;  %v2462_v55 = vld [vmem:[%s3692_s10] ss:$0 sm:$0xff] }
 0x2a4   : > { %2661 = vmatprep.subr.bf16.mxu0 %v3074_v17 }
 0x2a7   : > { %2662 = vmatpush3.bf16.msra.mxu0 %v2805_v56 }
 0x2a8   : > { %2663 = vmatprep.subr.bf16.mxu0 %v3074_v17 }
 0x2ab   : > { %2664 = vmatpush3.bf16.msra.mxu0 %v2806_v57  ;;  %v2463_v57 = vld [vmem:[%s3694_s5] ss:$0 sm:$0xff] }
 0x2ac   : > { %2665 = vmatprep.subr.bf16.mxu0 %v3074_v17 }
 0x2af   : > { %2666 = vmatpush3.bf16.msra.mxu0 %v2807_v59 }
 0x306   : > { %v1217_v21 = vpop.permute.xlu1 %1216 }
 0x307   : > { %v1222_v23 = vsel %vm1097_vm1, %v1217_v21, 0  ;;  %v2822_v21 = vld [vmem:[%s3688_s25 + $0xa4] ss:$16 sps:$4 sm:$0xff]  }
 0x30a   : > { %v1214_v24 = vpop.permute.xlu1 %1213 }
 0x35c   : > { %v1138_v3 = vpop.f32.mrf.mxu1 }
 0x35d   : > { %v1144_v5 = vmul.f32 0.125, %v1138_v3 }
 0x35e   : > { %v2631_v6 = vpop.f32.mrf.mxu1 }
 0x35f   : > { %v1151_v7 = vadd.f32 %v2449_v4, %v1144_v5 }
 0x360   : > { %v1141_v8 = vpop.f32.mrf.mxu1 }
 0x361   : > { %v1153_v9 = vsel %vm1152_vm3, %v1151_v7, -inf }
 0x362   : > { %1154 = vmax.xlane.f32.xlu0 %v1153_v9  ;;  %v2632_v10 = vpop.f32.mrf.mxu1  ;;  %v2808_v9 = vld [vmem:[%s3688_s25 + $0xe0] ss:$16 sps:$4 sm:$0xff]  }
 0x363   : > { %v2810_v10 = vld [vmem:[%s3688_s25 + $0xe4] ss:$16 sps:$4 sm:$0xff]  }
 0x3eb   : > { %v1155_v11 = vpop.xlane.xlu0 %1154 }
 0x3ec   : > { %v1156_v12 = vsub.f32 %v1151_v7, %v1155_v11  ;;  %v2811_v11 = vld [vmem:[%s3688_s25 + $0xe8] ss:$16 sps:$4 sm:$0xff]  }
 0x3ee   : > { %v1157_v13 = vmul.f32 1.442695, %v1156_v12  ;;  %v2813_v12 = vld [vmem:[%s3688_s25 + $0xec] ss:$16 sps:$4 sm:$0xff]  }
 0x3ef   : > { %1729 = vmatprep.subr.bf16.mxu0 %v2813_v12  ;;  %v2873_v12 = vld [vmem:[%s3369_s28 + $0xd8] sm:$0xff]  }
 0x3f0   : > { %2888 = vpow2.f32 %v1157_v13  ;;  %v2819_v13 = vld [vmem:[%s3688_s25 + $0xcc] ss:$16 sps:$4 sm:$0xff]  }
 0x3fd   : > { %v2889_v14 = vpop.eup %2888 }
 0x3fe   : > { %v1159_v15 = vsel %vm1152_vm3, %v2889_v14, 0.0 }
 0x3ff   : > { %1160 = vadd.xlane.f32.xlu0 %v1159_v15 }
 0x488   : > { %v1161_v18 = vpop.xlane.xlu0 %1160 }
 0x489   : > { %2890 = vrcp.f32 %v1161_v18 }
 0x496   : > { %v2891_v19 = vpop.eup %2890 }
 0x497   : > { %v1163_v20 = vmul.f32 %v2891_v19, %v2889_v14  ;;  %v2814_v14 = vld [vmem:[%s3688_s25 + $0xc0] ss:$16 sps:$4 sm:$0xff]  }
 0x499   : > { %v1164_v22 = vpack.c.bf16 %v1163_v20, %v1163_v20 }
 0x49b   : > { %2636 = vmatmul.mubr.msk.bf16.vlgmr.msra.gmra.mxu1 %vm1152_vm3, %v1164_v22  ;;  %v2825_v22 = vld [vmem:[%s3688_s25 + $0xac] ss:$16 sps:$4 sm:$0xff]  }
 0x49c   : > { %2640 = vmatpush3.bf16.xpose.msra.mxu1 %v1222_v23  ;;  %2641 = vmatprep.mubr.msk.bf16.mxu1 %vm3075_vm0, %v3074_v17  ;;  %v2820_v23 = vld [vmem:[%s3688_s25 + $0xa0] ss:$16 sps:$4 sm:$0xff]  }
 0x49d   : > { %2645 = vmatprep.subr.bf16.mxu1 %v3074_v17 }
 0x4a3   : > { %2642 = vmatmul.mubr.msk.bf16.vlgmr.msra.gmra.mxu1 %vm1097_vm1, %v1214_v24  ;;  %v2823_v24 = vld [vmem:[%s3688_s25 + $0xa8] ss:$16 sps:$4 sm:$0xff]  }
 0x4a4   : > { %2647 = vmatprep.mubr.msk.bf16.mxu1 %vm3075_vm0, %v3074_v17  ;;  %v2453_v17 = vld [vmem:[%s3690_s12] ss:$0 sm:$0xff] }
 0x55b   : > { %v1206_v25 = vpop.f32.mrf.mxu1 }
 0x55d   : > { %v2637_v26 = vpop.f32.mrf.mxu1 }
 0x55e   : > { %v2828_v26 = vld [vmem:[%s3688_s25 + $0x84] ss:$16 sps:$4 sm:$0xff]  }
 0x55f   : > { %v1209_v27 = vpop.f32.mrf.mxu1 }
 0x560   : > { %v2829_v27 = vld [vmem:[%s3688_s25 + $0x88] ss:$16 sps:$4 sm:$0xff]  }
 0x561   : > { %v2638_v28 = vpop.f32.mrf.mxu1 }
 0x562   : > { %v2831_v28 = vld [vmem:[%s3688_s25 + $0x8c] ss:$16 sps:$4 sm:$0xff]  }
 0x563   : > { %v1258_v29 = vpop.f32.mrf.mxu1 }
 0x564   : > { %v1264_v30 = vmul.f32 0.125, %v1258_v29  ;;  %v2834_v29 = vld [vmem:[%s3688_s25 + $0x64] ss:$16 sps:$4 sm:$0xff]  }
 0x565   : > { %v2643_v31 = vpop.f32.mrf.mxu1 }
 0x566   : > { %v1265_v32 = vadd.f32 %v2449_v4, %v1264_v30  ;;  %v2837_v30 = vld [vmem:[%s3688_s25 + $0x6c] ss:$16 sps:$4 sm:$0xff]   ;;  %v2832_v31 = vld [vmem:[%s3688_s25 + $0x60] ss:$16 sps:$4 sm:$0xff]  }
 0x567   : > { %v1261_v33 = vpop.f32.mrf.mxu1 }
 0x568   : > { %v1266_v34 = vsel %vm1152_vm3, %v1265_v32, -inf  ;;  %v2840_v33 = vld [vmem:[%s3688_s25 + $0x44] ss:$16 sps:$4 sm:$0xff]  }
 0x569   : > { %1267 = vmax.xlane.f32.xlu0 %v1266_v34  ;;  %v2644_v35 = vpop.f32.mrf.mxu1  ;;  %v2843_v34 = vld [vmem:[%s3688_s25 + $0x4c] ss:$16 sps:$4 sm:$0xff]  }
 0x56a   : > { %v2838_v35 = vld [vmem:[%s3688_s25 + $0x40] ss:$16 sps:$4 sm:$0xff]  }
 0x57f   : > { %1279 = vrot.lane.b32.xlu0 %v1096_v63, %s3076_s15 }
 0x5f2   : > { %v1268_v36 = vpop.xlane.xlu0 %1267 }
 0x5f3   : > { %v1269_v38 = vsub.f32 %v1265_v32, %v1268_v36  ;;  %v2835_v32 = vld [vmem:[%s3688_s25 + $0x68] ss:$16 sps:$4 sm:$0xff]  }
 0x5f4   : > { %v2841_v36 = vld [vmem:[%s3688_s25 + $0x48] ss:$16 sps:$4 sm:$0xff]  }
 0x5f5   : > { %v1270_v39 = vmul.f32 1.442695, %v1269_v38  ;;  %v2846_v38 = vld [vmem:[%s3688_s25 + $0x24] ss:$16 sps:$4 sm:$0xff]  }
 0x5f6   : > { %v1280_v40 = vpop.permute.xlu0 %1279 }
 0x5f7   : > { %2892 = vpow2.f32 %v1270_v39  ;;  %v1285_v41 = vsel %vm1168_vm2, %v1280_v40, 0  ;;  %v2849_v39 = vld [vmem:[%s3688_s25 + $0x2c] ss:$16 sps:$4 sm:$0xff]   ;;  %v2844_v40 = vld [vmem:[%s3688_s25 + $0x20] ss:$16 sps:$4 sm:$0xff]  }
 0x5f8   : > { %2646 = vmatpush3.bf16.msra.mxu1 %v1285_v41  ;;  %v2847_v41 = vld [vmem:[%s3688_s25 + $0x28] ss:$16 sps:$4 sm:$0xff]  }
 0x5f9   : > { %1688 = vmatprep.subr.bf16.mxu1 %v2810_v10  ;;  %v2871_v10 = vld [vmem:[%s3369_s28 + $0xa0] sm:$0xff]  }
 0x604   : > { %v2893_v42 = vpop.eup %2892 }
 0x605   : > { %v1272_v46 = vsel %vm1152_vm3, %v2893_v42, 0.0 }
 0x606   : > { %1273 = vadd.xlane.f32.xlu1 %v1272_v46  ;;  %v2855_v46 = vld [vmem:[%s3688_s25 + $0xc] ss:$16 sps:$4 sm:$0xff]  }
 0x68f   : > { %v1274_v47 = vpop.xlane.xlu1 %1273 }
 0x690   : > { %2894 = vrcp.f32 %v1274_v47  ;;  %v2850_v47 = vld [vmem:[%s3688_s25] ss:$16 sps:$4 sm:$0xff]  }
 0x69d   : > { %v2895_v48 = vpop.eup %2894 }
 0x69e   : > { %v1276_v49 = vmul.f32 %v2895_v48, %v2893_v42  ;;  %v2852_v42 = vld [vmem:[%s3688_s25 + $0x4] ss:$16 sps:$4 sm:$0xff]   ;;  %v2853_v48 = vld [vmem:[%s3688_s25 + $0x8] ss:$16 sps:$4 sm:$0xff]  }
 0x6a0   : > { %v1277_v50 = vpack.c.bf16 %v1276_v49, %v1276_v49  ;;  %v2856_v49 = vld [vmem:[%s3369_s28 + $0x78] sm:$0xff]  }
 0x6a2   : > { %2648 = vmatmul.mubr.msk.bf16.vlgmr.msra.gmra.mxu1 %vm1152_vm3, %v1277_v50  ;;  %v2857_v50 = vld [vmem:[%s3369_s28 + $0xf8] sm:$0xff]  }
 0x6a3   : > { %1720 = vmatprep.mubr.bf16.mxu1 %v3073_v16  ;;  %1689 = vmatpush1.bf16.msra.mxu1 %v2808_v9  ;;  %v2870_v9 = vld [vmem:[%s3369_s28 + $0x20] sm:$0xff]  }
 0x762   : > { %v1321_v60 = vpop.f32.mrf.mxu1 }
 0x763   : > { %1328 = vrot.lane.b32.xlu0 %v1321_v60, %s3076_s15 }
 0x764   : > { %v2649_v61 = vpop.f32.mrf.mxu1 }
 0x765   : > { %v2858_v61 = vld [vmem:[%s3369_s28 + $0x38] sm:$0xff]  }
 0x766   : > { %v1324_v62 = vpop.f32.mrf.mxu1 }
 0x767   : > { %v2859_v62 = vld [vmem:[%s3369_s28 + $0xb8] sm:$0xff]  }
 0x768   : > { %v2650_v63 = vpop.f32.mrf.mxu1 }
 0x7d5   : > { %v1329_v0 = vpop.permute.xlu0 %1328 }
 0x7d6   : > { %v1331_v1 = vsel %vm1097_vm1, %v1206_v25, %v1329_v0  ;;  %v2826_v25 = vld [vmem:[%s3688_s25 + $0x80] ss:$16 sps:$4 sm:$0xff]   ;;  %v2860_v0 = vld [vmem:[%s3369_s28 + $0x70] sm:$0xff]  }
 0x7d7   : > { %v1332_v2 = vpack.c.bf16 %v1331_v1, %v1331_v1  ;;  %v2861_v1 = vld [vmem:[%s3369_s28 + $0xf0] sm:$0xff]  }
 0x7d9   : > { %2668 = vmatmul.mubr.bf16.vlgmr.msra.gmra.mxu0 %v1332_v2  ;;  %v2862_v2 = vld [vmem:[%s3369_s28 + $0x30] sm:$0xff]  }
 0x7da   : > { %1761 = vmatprep.mubr.bf16.mxu0 %v3073_v16  ;;  %v2816_v16 = vld [vmem:[%s3688_s25 + $0xc4] ss:$16 sps:$4 sm:$0xff]   ;;  %1730 = vmatpush1.bf16.msra.mxu0 %v2811_v11 }
 0x7db   : > { %1690 = vmatprep.subr.bf16.mxu1 %v2816_v16  ;;  %1731 = vmatprep.subr.bf16.mxu0 %v2819_v13  ;;  %v2872_v11 = vld [vmem:[%s3369_s28 + $0x58] sm:$0xff]  }
 0x7dc   : > { %1691 = vmatpush1.bf16.msra.mxu1 %v2814_v14  ;;  %v2874_v16 = vld [vmem:[%s3369_s28 + $0x18] sm:$0xff]   ;;  %v2876_v14 = vld [vmem:[%s3369_s28 + $0x50] sm:$0xff]  }
 0x7dd   : > { %1692 = vmatprep.subr.bf16.mxu1 %v2822_v21  ;;  %v2875_v13 = vld [vmem:[%s3369_s28 + $0x98] sm:$0xff]   ;;  %v2882_v21 = vld [vmem:[%s3369_s28 + $0x8] sm:$0xff]  }
 0x7e0   : > { %1693 = vmatpush1.bf16.msra.mxu1 %v2820_v23  ;;  %v2884_v23 = vld [vmem:[%s3369_s28 + $0x40] sm:$0xff]  }
 0x7e1   : > { %1694 = vmatprep.subr.bf16.mxu1 %v2828_v26  ;;  %v2887_v26 = vld [vmem:[%s3369_s28 + $0x80] sm:$0xff]  }
 0x7e4   : > { %1695 = vmatpush1.bf16.msra.mxu1 %v2826_v25  ;;  %v2886_v25 = vld [vmem:[%s3369_s28] sm:$0xff]  }
 0x7e5   : > { %1696 = vmatprep.subr.bf16.mxu1 %v2834_v29 }
 0x7e8   : > { %1697 = vmatpush1.bf16.msra.mxu1 %v2832_v31 }
 0x7e9   : > { %1698 = vmatprep.subr.bf16.mxu1 %v2840_v33 }
 0x7ec   : > { %1699 = vmatpush1.bf16.msra.mxu1 %v2838_v35 }
 0x7ed   : > { %1700 = vmatprep.subr.bf16.mxu1 %v2846_v38 }
 0x7f0   : > { %1701 = vmatpush1.bf16.msra.mxu1 %v2844_v40 }
 0x7f1   : > { %1702 = vmatprep.subr.bf16.mxu1 %v2852_v42 }
 0x7f4   : > { %1703 = vmatpush1.bf16.msra.mxu1 %v2850_v47 }
 0x7f5   : > { %2563 = vmatprep.subr.bf16.mxu1 %v2856_v49 }
 0x899   : > { %v1438_v3 = vpop.f32.mrf.mxu0 }
 0x89a   : > { %v1439_v4 = vadd.f32 %v2453_v17, %v1438_v3  ;;  %v2863_v17 = vld [vmem:[%s3369_s28 + $0xb0] sm:$0xff]   ;;  %v2864_v3 = vld [vmem:[%s3369_s28 + $0x68] sm:$0xff]  }
 0x89b   : > { %v2669_v5 = vpop.f32.mrf.mxu0 }
 0x89c   : > { %v1444_v6 = vadd.f32 %v1439_v4, %v3404_v37  ;;  %v2817_v37 = vld [vmem:[%s3688_s25 + $0xc8] ss:$16 sps:$4 sm:$0xff]   ;;  %v2865_v4 = vld [vmem:[%s3369_s28 + $0xe8] sm:$0xff]  }
 0x89d   : > { %v1441_v7 = vpop.f32.mrf.mxu0  ;;  %1732 = vmatpush1.bf16.msra.mxu0 %v2817_v37  ;;  %v2866_v5 = vld [vmem:[%s3369_s28 + $0x28] sm:$0xff]   ;;  %v2877_v37 = vld [vmem:[%s3369_s28 + $0xd0] sm:$0xff]  }
 0x89e   : > { %1447 = vadd.xlane.f32.xlu0 %v1444_v6  ;;  %1733 = vmatprep.subr.bf16.mxu0 %v2825_v22  ;;  %v2868_v7 = vld [vmem:[%s3369_s28 + $0x60] sm:$0xff]   ;;  %v2883_v22 = vld [vmem:[%s3369_s28 + $0x88] sm:$0xff]  }
 0x89f   : > { %v2670_v8 = vpop.f32.mrf.mxu0 }
 0x8a0   : > { %v2869_v8 = vld [vmem:[%s3369_s28 + $0xe0] sm:$0xff]  }
 0x8a1   : > { %1734 = vmatpush1.bf16.msra.mxu0 %v2823_v24  ;;  %v2885_v24 = vld [vmem:[%s3369_s28 + $0xc0] sm:$0xff]  }
 0x8a2   : > { %1735 = vmatprep.subr.bf16.mxu0 %v2831_v28  ;;  %v1522_v28 = vsub.s32 3, %v3423_v43 }
 0x8a5   : > { %1736 = vmatpush1.bf16.msra.mxu0 %v2829_v27  ;;  %v1506_v27 = vld [vmem:[%s3353_s7] sm:$0xf] }
 0x8a6   : > { %1737 = vmatprep.subr.bf16.mxu0 %v2837_v30  ;;  %v1511_v29 = vrot.slane %v1506_v27, %v871_v45  ;;  %v1519_v30 = vrot.slane %v1506_v27, %v879_v58  ;;  %v1515_v33 = vrot.slane %v1506_v27, %v875_v44 }
 0x8a9   : > { %1738 = vmatpush1.bf16.msra.mxu0 %v2835_v32 }
 0x8aa   : > { %1739 = vmatprep.subr.bf16.mxu0 %v2843_v34  ;;  %v1523_v34 = vrot.slane %v1506_v27, %v1522_v28  ;;  %v2529_v28 = vld [vmem:[%s790_s6] ss:$0 sm:$0xff] }
 0x8ad   : > { %1740 = vmatpush1.bf16.msra.mxu0 %v2841_v36 }
 0x8ae   : > { %1741 = vmatprep.subr.bf16.mxu0 %v2849_v39 }
 0x8b1   : > { %1742 = vmatpush1.bf16.msra.mxu0 %v2847_v41 }
 0x8b2   : > { %1743 = vmatprep.subr.bf16.mxu0 %v2855_v46 }
 0x8b5   : > { %1744 = vmatpush1.bf16.msra.mxu0 %v2853_v48 }
 0x8b6   : > { %2585 = vmatprep.subr.bf16.mxu0 %v2857_v50 }
 0x927   : > { %v1448_v15 = vpop.xlane.xlu0 %1447 }
 0x928   : > { %v1450_v18 = vmul.f32 0.0078125, %v1448_v15  ;;  %v2878_v15 = vld [vmem:[%s3369_s28 + $0x10] sm:$0xff]  }
 0x92a   : > { %v1451_v19 = vsub.f32 %v1444_v6, %v1450_v18  ;;  %v2867_v6 = vld [vmem:[%s3369_s28 + $0xa8] sm:$0xff]   ;;  %v2879_v18 = vld [vmem:[%s3369_s28 + $0x90] sm:$0xff]  }
 0x92c   : > { %v1452_v20 = vmul.f32 %v1451_v19, %v1451_v19 }
 0x92e   : > { %1453 = vadd.xlane.f32.xlu1 %v1452_v20  ;;  %v2881_v20 = vld [vmem:[%s3369_s28 + $0xc8] sm:$0xff]  }
 0x9b7   : > { %v1454_v51 = vpop.xlane.xlu1 %1453 }
 0x9b8   : > { %v1455_v52 = vmul.f32 0.0078125, %v1454_v51 }
 0x9ba   : > { %v1456_v53 = vadd.f32 1e-12, %v1455_v52 }
 0x9bc   : > { %2896 = vrsqrt.f32 %v1456_v53 }
 0x9c9   : > { %v2897_v54 = vpop.eup %2896 }
 0x9ca   : > { %v1458_v56 = vmul.f32 %v2897_v54, %v1451_v19  ;;  %v2880_v19 = vld [vmem:[%s3369_s28 + $0x48] sm:$0xff]  }
 0x9cc   : > { %v1465_v59 = vmul.f32 %v2462_v55, %v1458_v56 }
 0x9ce   : > { %v3533_v60 = vadd.f32 %v2463_v57, %v1465_v59 }
 0x9d0   : > { %v1473_v63 = vpack.c.bf16 %v3533_v60, %v3533_v60 }
 0x9d2   : > { %1721 = vmatmul.mubr.bf16.vlgmr.msra.gmra.mxu1 %v1473_v63  ;;  %1762 = vmatmul.mubr.bf16.vlgmr.msra.gmra.mxu0 %v1473_v63 }
 0x9d3   : > { %2564 = vmatpush3.bf16.msra.mxu1 %v2858_v61  ;;  %2586 = vmatpush3.bf16.msra.mxu0 %v2859_v62 }
 0x9d4   : > { %2565 = vmatprep.subr.bf16.mxu1 %v2860_v0  ;;  %2587 = vmatprep.subr.bf16.mxu0 %v2861_v1 }
 0x9d7   : > { %2566 = vmatpush3.bf16.msra.mxu1 %v2862_v2  ;;  %2588 = vmatpush3.bf16.msra.mxu0 %v2863_v17 }
 0x9d8   : > { %2567 = vmatprep.subr.bf16.mxu1 %v2864_v3  ;;  %2589 = vmatprep.subr.bf16.mxu0 %v2865_v4 }
 0x9db   : > { %2568 = vmatpush3.bf16.msra.mxu1 %v2866_v5  ;;  %2590 = vmatpush3.bf16.msra.mxu0 %v2867_v6 }
 0x9dc   : > { %2569 = vmatprep.subr.bf16.mxu1 %v2868_v7  ;;  %2591 = vmatprep.subr.bf16.mxu0 %v2869_v8  ;;  %v2496_v8 = vld [vmem:[%s787_s27] ss:$0 sm:$0xff] }
 0x9df   : > { %2570 = vmatpush3.bf16.msra.mxu1 %v2870_v9  ;;  %2592 = vmatpush3.bf16.msra.mxu0 %v2871_v10 }
 0x9e0   : > { %2571 = vmatprep.subr.bf16.mxu1 %v2872_v11  ;;  %2593 = vmatprep.subr.bf16.mxu0 %v2873_v12 }
 0x9e3   : > { %2572 = vmatpush3.bf16.msra.mxu1 %v2874_v16  ;;  %2594 = vmatpush3.bf16.msra.mxu0 %v2875_v13 }
 0x9e4   : > { %2573 = vmatprep.subr.bf16.mxu1 %v2876_v14  ;;  %2595 = vmatprep.subr.bf16.mxu0 %v2877_v37 }
 0x9e7   : > { %2574 = vmatpush3.bf16.msra.mxu1 %v2878_v15  ;;  %2596 = vmatpush3.bf16.msra.mxu0 %v2879_v18 }
 0x9e8   : > { %2575 = vmatprep.subr.bf16.mxu1 %v2880_v19  ;;  %2597 = vmatprep.subr.bf16.mxu0 %v2881_v20 }
 0x9eb   : > { %2576 = vmatpush3.bf16.msra.mxu1 %v2882_v21  ;;  %2598 = vmatpush3.bf16.msra.mxu0 %v2883_v22 }
 0x9ec   : > { %2577 = vmatprep.subr.bf16.mxu1 %v2884_v23  ;;  %2599 = vmatprep.subr.bf16.mxu0 %v2885_v24 }
 0x9ef   : > { %2578 = vmatpush3.bf16.msra.mxu1 %v2886_v25  ;;  %2600 = vmatpush3.bf16.msra.mxu0 %v2887_v26 }
 0xa92   : > { %v1722_v31 = vpop.f32.mrf.mxu1  ;;  %v1763_v32 = vpop.f32.mrf.mxu0 }
 0xa93   : > { %v1723_v35 = vadd.f32 %v1722_v31, %v1511_v29  ;;  %v1764_v36 = vadd.f32 %v1763_v32, %v1519_v30 }
 0xa94   : > { %v1724_v38 = vpop.f32.mrf.mxu1  ;;  %v1765_v39 = vpop.f32.mrf.mxu0 }
 0xa95   : > { %v1774_v40 = vmul.f32 0.70710677, %v1723_v35  ;;  %v1776_v41 = vmul.f32 0.70710677, %v1764_v36  ;;  %v1725_v42 = vadd.f32 %v1724_v38, %v1515_v33  ;;  %v1766_v46 = vadd.f32 %v1765_v39, %v1523_v34 }
 0xa96   : > { %v1726_v47 = vpop.f32.mrf.mxu1  ;;  %v1767_v48 = vpop.f32.mrf.mxu0  ;;  %v1770_v54 = vmul.f32 0.5, %v1723_v35  ;;  %v1772_v56 = vmul.f32 0.5, %v1764_v36 }
 0xa97   : > { %2898 = verf.f32 %v1774_v40  ;;  %v1775_v45 = vmul.f32 0.70710677, %v1725_v42  ;;  %v1777_v50 = vmul.f32 0.70710677, %v1766_v46  ;;  %v1771_v57 = vmul.f32 0.5, %v1725_v42 }
 0xa98   : > { %2900 = verf.f32 %v1776_v41  ;;  %v1727_v58 = vpop.f32.mrf.mxu1  ;;  %v1768_v49 = vpop.f32.mrf.mxu0  ;;  %v1773_v62 = vmul.f32 0.5, %v1766_v46 }
 0xa99   : > { %2902 = verf.f32 %v1775_v45 }
 0xa9a   : > { %2904 = verf.f32 %v1777_v50 }
 0xaa4   : > { %v2899_v43 = vpop.eup %2898 }
 0xaa5   : > { %v2901_v44 = vpop.eup %2900  ;;  %v1782_v51 = vadd.f32 1.0, %v2899_v43 }
 0xaa6   : > { %v1784_v52 = vadd.f32 1.0, %v2901_v44  ;;  %v2903_v53 = vpop.eup %2902 }
 0xaa7   : > { %v2905_v55 = vpop.eup %2904  ;;  %v1783_v59 = vadd.f32 1.0, %v2903_v53  ;;  %v1786_v61 = vmul.f32 %v1782_v51, %v1770_v54 }
 0xaa8   : > { %v1785_v63 = vadd.f32 1.0, %v2905_v55  ;;  %v1788_v0 = vmul.f32 %v1784_v52, %v1772_v56 }
 0xaa9   : > { %v1787_v1 = vmul.f32 %v1783_v59, %v1771_v57  ;;  %v1790_v3 = vpack.c.bf16 %v1786_v61, %v1786_v61 }
 0xaaa   : > { %v1789_v2 = vmul.f32 %v1785_v63, %v1773_v62  ;;  %v1792_v5 = vpack.c.bf16 %v1788_v0, %v1788_v0 }
 0xaab   : > { %v1791_v17 = vpack.c.bf16 %v1787_v1, %v1787_v1 }
 0xaac   : > { %v1793_v4 = vpack.c.bf16 %v1789_v2, %v1789_v2 }
 0xaad   : > { %2089 = vmatprep.mubr.bf16.mxu1 %v1791_v17 }
 0xaae   : > { %2129 = vmatprep.mubr.bf16.mxu0 %v1793_v4  ;;  %2090 = vmatmul.mubr.bf16.vlgmr.msra.gmra.mxu1 %v1790_v3 }
 0xaaf   : > { %2130 = vmatmul.mubr.bf16.vlgmr.msra.gmra.mxu0 %v1792_v5 }
 0xb6e   : > { %v2579_v6 = vpop.f32.mrf.mxu1 }
 0xb6f   : > { %v2601_v7 = vpop.f32.mrf.mxu0 }
 0xb70   : > { %v2580_v9 = vpop.f32.mrf.mxu1 }
 0xb71   : > { %v2581_v10 = vadd.f32 %v2580_v9, %v2579_v6  ;;  %v2602_v11 = vpop.f32.mrf.mxu0 }
 0xb72   : > { %v2582_v12 = vpop.f32.mrf.mxu1  ;;  %v2603_v13 = vadd.f32 %v2602_v11, %v2601_v7 }
 0xb73   : > { %v2092_v16 = vadd.f32 %v2581_v10, %v2496_v8  ;;  %v2604_v14 = vpop.f32.mrf.mxu0 }
 0xb74   : > { %v2583_v37 = vpop.f32.mrf.mxu1 }
 0xb75   : > { %v2132_v15 = vadd.f32 %v2603_v13, %v2092_v16  ;;  %v2605_v18 = vpop.f32.mrf.mxu0 }
 0xb77   : > { %v2137_v19 = vadd.f32 %v2132_v15, %v3533_v60  ;;  %v2530_v60 = vld [vmem:[%s793_s8] ss:$0 sm:$0xff] }
 0xb79   : > { %2140 = vadd.xlane.f32.xlu1 %v2137_v19 }
 0xc02   : > { %v2141_v20 = vpop.xlane.xlu1 %2140 }
 0xc03   : > { %v2142_v21 = vmul.f32 0.0078125, %v2141_v20 }
 0xc05   : > { %v2143_v22 = vsub.f32 %v2137_v19, %v2142_v21 }
 0xc07   : > { %v2144_v23 = vmul.f32 %v2143_v22, %v2143_v22 }
 0xc09   : > { %2145 = vadd.xlane.f32.xlu1 %v2144_v23 }
 0xc92   : > { %v2146_v24 = vpop.xlane.xlu1 %2145 }
 0xc93   : > { %v2147_v25 = vmul.f32 0.0078125, %v2146_v24 }
 0xc95   : > { %v2148_v26 = vadd.f32 1e-12, %v2147_v25 }
 0xc97   : > { %2906 = vrsqrt.f32 %v2148_v26 }
 0xca4   : > { %v2907_v27 = vpop.eup %2906 }
 0xca5   : > { %v2150_v29 = vmul.f32 %v2907_v27, %v2143_v22 }
 0xca7   : > { %v2157_v30 = vmul.f32 %v2529_v28, %v2150_v29  ;;  %2169 = sbr.rel (%p2531_p7) target bundleno = 3247 (0xcaf), region = 104 }
 0xca9   : > { %v2164_v31 = vadd.f32 %v2530_v60, %v2157_v30 }
 0xcab   : > { %2165 = vst [vmem:[#allocation2] sm:$0xff] %v2164_v31 }
 0xcac   : > { %v2170_v32 = vpack.c.bf16 %v2164_v31, %v2164_v31 }
 0xcae   : > { %2171 = vst [vmem:[%s3367_s16] sm:$0xf] %v2170_v32 }
 0xcaf PF: > { %s3698_s4 = sld [smem:[#allocation14_spill]] }
 0xcb0   : > { %s3699_s21 = sld [smem:[#allocation10_spill]] }
 0xcb1   : > { %s3700_s22 = sld [smem:[#allocation11_spill]] }
 0xcb2   : > { %s3701_s23 = sld [smem:[#allocation17_spill]] }
 0xcb3   : > { %s3702_s24 = sld [smem:[#allocation12_spill]] }
 0xcb4   : > { %s3703_s25 = sld [smem:[#allocation13_spill]] }
 0xcb5   : > { %s32_s28 = sadd.s32 1, %s3698_s4   ;;  %s3704_s26 = sld [smem:[#allocation15_spill]] }
 0xcb6   : > { %p29_p1 = scmp.ge.s32.totalorder %s32_s28, 6   ;;  %s3705_s27 = sld [smem:[#allocation16_spill]] }
 0xcb8   :  { %31 = sbr.rel (!%p29_p1) target bundleno = 24 (0x18), region = 189 }
 0xcbd   :  { %2191 = vsyncpa [#allocation4], 1 }
 0xcbe   :  { %2193 = vsyncpa [#allocation4 + $0x1], 1 }
 0xcbf   :  { %2194 = vsyncpa [#allocation6], 1 }
 0xcc0   :  { %2196 = vsyncpa [#allocation6 + $0x1], 1 }

</bundles_post_ra>
